<compile_context>
chip_gen: v7x
topology: tpu7x:2x2x1
jax: 0.10.0
libtpu: 0.0.40
codegen_flags: <defaults>
</compile_context>

<pallas_src>
import functools

import jax
import jax.numpy as jnp
from jax.experimental import pallas as pl
from jax.experimental.pallas import tpu as pltpu


def _round_up(x, m):
    return (x + m - 1) // m * m


# ---------------- fused stride-1 3x3 conv + BN (+shortcut/residual/relu) -----

def _conv3x3_s1_kernel(*refs, R, Wo_pad, fuse_shortcut, has_residual,
                       emit_preact, relu):
    """One (image, row-group, cout-tile) step of a stride-1 3x3 conv.

    Ref order: xa (R rows), xhalo (8 rows), weights (3,3,Cin,tn), bias (1,tn),
               [xs, wsc], [residual], out, [preact].
    The nine taps are accumulated in a local f32 value (single pass, no K grid).
    """
    it = iter(refs)
    xa_ref = next(it)            # (1, R, Wp, Cin_p)  input rows [g*R, g*R+R)
    xh_ref = next(it)            # (1, 8, Wp, Cin_p)  input rows [g*R+R, g*R+R+8)
    w_ref = next(it)             # (3, 3, Cin_p, tn)  BN scale folded in
    b_ref = next(it)             # (1, tn) f32        BN bias (+ shortcut bias)
    xs_ref = next(it) if fuse_shortcut else None     # (1, R, Wo_p, Cs_p)
    wsc_ref = next(it) if fuse_shortcut else None    # (Cs_p, tn)
    r_ref = next(it) if has_residual else None       # (1, R, Wo_p, tn)
    o_ref = next(it)
    pre_ref = next(it) if emit_preact else None

    xrows = jnp.concatenate([xa_ref[0], xh_ref[0]], axis=0)   # (R+8, Wp, Cin_p)
    cin = xrows.shape[-1]
    m = R * Wo_pad

    acc = None
    for dy in range(3):
        for dx in range(3):
            lhs = xrows[dy:dy + R, dx:dx + Wo_pad, :].reshape(m, cin)
            d = jnp.dot(lhs, w_ref[dy, dx], preferred_element_type=jnp.float32)
            acc = d if acc is None else acc + d

    if fuse_shortcut:
        xs = xs_ref[0].reshape(m, xs_ref.shape[-1])
        acc = acc + jnp.dot(xs, wsc_ref[...], preferred_element_type=jnp.float32)

    acc = acc + b_ref[...].astype(jnp.float32)        # (1, tn) broadcasts over m

    if has_residual:
        acc = acc + r_ref[0].reshape(m, -1).astype(jnp.float32)

    tn = o_ref.shape[-1]
    if emit_preact:
        pre_ref[0] = acc.reshape(R, Wo_pad, tn).astype(pre_ref.dtype)
    if relu:
        acc = jnp.maximum(acc, 0.0)
    o_ref[0] = acc.reshape(R, Wo_pad, tn).astype(o_ref.dtype)


def fused_conv3x3_s1(x_nhwc, w, scale, bias, *, xs=None, wsc=None, residual=None,
                     relu=True, emit_preact=False, compute_dtype=jnp.bfloat16):
    """stride-1 3x3 conv + folded BN (+ fused 1x1 shortcut / residual / relu).

    x_nhwc : (N, H, W, Cin)        w : (Cout, Cin, 3, 3)
    xs     : (N, H, W, Cs) strided shortcut input (already strided), or None
    wsc    : (Cs, Cout) 1x1 shortcut weight with BN scale folded in, or None
    residual : (N, H, W, Cout) identity residual, or None
    Returns (N, H, W, Cout) in compute_dtype (and preact if emit_preact).
    """
    N, H, W, Cin = x_nhwc.shape
    Cout = w.shape[0]
    Ho, Wo = H, W

    Cin_p = _round_up(Cin, 128)
    Cout_p = _round_up(Cout, 128)
    Wo_p = _round_up(Wo, 8)
    Wp_p = _round_up(Wo_p + 2, 8)

    # Row-group size: as big as possible while keeping the per-step input block
    # (and its double buffer) comfortably inside a v7x-safe VMEM budget.
    itemsize = jnp.dtype(compute_dtype).itemsize
    R = min(32, _round_up(Ho, 8))
    while R > 8 and R * Wp_p * Cin_p * itemsize > (2 << 20):
        R -= 8
    G = -(-Ho // R)            # row groups per image
    Hr = G * R                 # padded output rows
    Hp = Hr + 8                # padded input rows (halo block always in range)
    rb = R // 8                # halo block-index step (halo block height = 8)

    # Padded, halo'd NHWC input (1-pixel conv halo at top/left, zeros elsewhere).
    xa = jnp.pad(x_nhwc.astype(compute_dtype),
                 ((0, 0), (1, Hp - H - 1), (1, Wp_p - W - 1), (0, Cin_p - Cin)))

    # (3, 3, Cin_p, Cout_p) weights with BN scale folded into the Cout axis.
    wt = jnp.transpose(w, (2, 3, 1, 0)) * scale[None, None, None, :]
    wt = jnp.pad(wt, ((0, 0), (0, 0), (0, Cin_p - Cin),
                      (0, Cout_p - Cout))).astype(compute_dtype)
    b = jnp.pad(bias.reshape(1, Cout),
                ((0, 0), (0, Cout_p - Cout))).astype(jnp.float32)

    tn = Cout_p if Cout_p <= 512 else 512    # full Cout per step for BasicBlock
    J = Cout_p // tn

    fuse_shortcut = xs is not None
    has_residual = residual is not None

    in_specs = [
        pl.BlockSpec((1, R, Wp_p, Cin_p), lambda n, g, j: (n, g, 0, 0)),
        pl.BlockSpec((1, 8, Wp_p, Cin_p), lambda n, g, j: (n, (g + 1) * rb, 0, 0)),
        pl.BlockSpec((3, 3, Cin_p, tn), lambda n, g, j: (0, 0, 0, j)),
        pl.BlockSpec((1, tn), lambda n, g, j: (0, j)),
    ]
    args = [xa, xa, wt, b]

    if fuse_shortcut:
        Cs = xs.shape[-1]
        Cs_p = _round_up(Cs, 128)
        xs_p = jnp.pad(xs.astype(compute_dtype),
                       ((0, 0), (0, Hr - Ho), (0, Wo_p - Wo), (0, Cs_p - Cs)))
        wsc_p = jnp.pad(wsc, ((0, Cs_p - Cs),
                              (0, Cout_p - Cout))).astype(compute_dtype)
        in_specs += [pl.BlockSpec((1, R, Wo_p, Cs_p), lambda n, g, j: (n, g, 0, 0)),
                     pl.BlockSpec((Cs_p, tn), lambda n, g, j: (0, j))]
        args += [xs_p, wsc_p]

    if has_residual:
        r_p = jnp.pad(residual.astype(compute_dtype),
                      ((0, 0), (0, Hr - Ho), (0, Wo_p - Wo), (0, Cout_p - Cout)))
        in_specs += [pl.BlockSpec((1, R, Wo_p, tn), lambda n, g, j: (n, g, 0, j))]
        args += [r_p]

    out_block = pl.BlockSpec((1, R, Wo_p, tn), lambda n, g, j: (n, g, 0, j))
    out_sds = jax.ShapeDtypeStruct((N, Hr, Wo_p, Cout_p), compute_dtype)
    if emit_preact:
        out_shape = (out_sds, out_sds)
        out_specs = (out_block, out_block)
    else:
        out_shape = out_sds
        out_specs = out_block

    kernel = functools.partial(
        _conv3x3_s1_kernel, R=R, Wo_pad=Wo_p,
        fuse_shortcut=fuse_shortcut, has_residual=has_residual,
        emit_preact=emit_preact, relu=relu)

    res = pl.pallas_call(
        kernel,
        out_shape=out_shape,
        grid_spec=pltpu.PrefetchScalarGridSpec(
            num_scalar_prefetch=0,
            grid=(N, G, J),
            in_specs=in_specs,
            out_specs=out_specs),
        compiler_params=pltpu.CompilerParams(
            dimension_semantics=("parallel", "parallel", "parallel"),
            vmem_limit_bytes=48 * 1024 * 1024),
    )(*args)

    if emit_preact:
        o, p = res
        return o[:, :Ho, :Wo, :Cout], p[:, :Ho, :Wo, :Cout]
    return res[:, :Ho, :Wo, :Cout]


# ------------- strided (stride!=1) conv1: im2col matmul fallback -------------

def _matmul_bias_act_kernel(p_ref, w_ref, b_ref, o_ref, *, relu):
    """Single-pass (tm, K) x (K, tn) matmul + bias (+relu); no K grid axis."""
    acc = jnp.dot(p_ref[...], w_ref[...], preferred_element_type=jnp.float32)
    acc = acc + b_ref[...].astype(jnp.float32)
    if relu:
        acc = jnp.maximum(acc, 0.0)
    o_ref[...] = acc.astype(o_ref.dtype)


def _im2col_3x3(x_nhwc, stride):
    """x_nhwc: (N,H,W,C) -> (N*Ho*Wo, 9*C) with padding=1, kernel=3."""
    N, H, W, C = x_nhwc.shape
    xp = jnp.pad(x_nhwc, ((0, 0), (1, 1), (1, 1), (0, 0)))
    Ho = (H - 1) // stride + 1
    Wo = (W - 1) // stride + 1
    taps = []
    for dy in range(3):
        for dx in range(3):
            taps.append(xp[:, dy:dy + H:stride, dx:dx + W:stride, :])
    patches = jnp.concatenate(taps, axis=-1)          # (N, Ho, Wo, 9*C)
    return patches.reshape(N * Ho * Wo, 9 * C), (N, Ho, Wo)


def conv3x3_im2col(x_nhwc, w, scale, bias, *, stride, relu=True,
                   compute_dtype=jnp.bfloat16):
    N, H, W, Cin = x_nhwc.shape
    Cout = w.shape[0]
    # Cast to bf16 BEFORE the 9-tap concat so the intermediate is half-size.
    patches, (N_, Ho, Wo) = _im2col_3x3(x_nhwc.astype(compute_dtype), stride)
    M, K = patches.shape

    w_mat = jnp.transpose(w, (2, 3, 1, 0)).reshape(K, Cout) * scale[None, :]

    K_p = _round_up(K, 128)
    C_p = _round_up(Cout, 128)
    tm = min(512, _round_up(M, 8))
    M_p = _round_up(M, tm)
    tn = C_p if C_p <= 512 else 512      # full Cout per step -> no re-streaming

    p_p = jnp.pad(patches, ((0, M_p - M), (0, K_p - K)))
    w_p = jnp.pad(w_mat, ((0, K_p - K), (0, C_p - Cout))).astype(compute_dtype)
    b_p = jnp.pad(bias.reshape(1, Cout),
                  ((0, 0), (0, C_p - Cout))).astype(jnp.float32)

    out = pl.pallas_call(
        functools.partial(_matmul_bias_act_kernel, relu=relu),
        out_shape=jax.ShapeDtypeStruct((M_p, C_p), compute_dtype),
        grid_spec=pltpu.PrefetchScalarGridSpec(
            num_scalar_prefetch=0,
            grid=(M_p // tm, C_p // tn),
            in_specs=[pl.BlockSpec((tm, K_p), lambda i, j: (i, 0)),
                      pl.BlockSpec((K_p, tn), lambda i, j: (0, j)),
                      pl.BlockSpec((1, tn), lambda i, j: (0, j))],
            out_specs=pl.BlockSpec((tm, tn), lambda i, j: (i, j))),
        compiler_params=pltpu.CompilerParams(
            dimension_semantics=("parallel", "parallel"),
            vmem_limit_bytes=48 * 1024 * 1024),
    )(p_p, w_p, b_p)
    return out[:M, :Cout].reshape(N, Ho, Wo, Cout)


# ------------------------------ JAX glue --------------------------------------

def _fold_bn(gamma, beta, mean, var, eps=1e-5):
    scale = gamma / jnp.sqrt(var + eps)
    bias = beta - mean * scale
    return scale, bias


@functools.partial(jax.jit, static_argnames=("stride", "is_last", "compute_dtype"))
def basic_block_forward(x_nchw, params, *, stride, is_last,
                        compute_dtype=jnp.bfloat16):
    """Reproduces BasicBlock.forward (eval-mode BN). x_nchw: (N,Cin,H,W) f32."""
    in_planes = x_nchw.shape[1]
    planes = params["w1"].shape[0]
    has_shortcut = (stride != 1) or (in_planes != planes)

    x = jnp.transpose(x_nchw, (0, 2, 3, 1))        # -> NHWC

    # conv1 (3x3, stride) + bn1 + relu
    s1, b1 = _fold_bn(*params["bn1"])
    if stride == 1:
        y1 = fused_conv3x3_s1(x, params["w1"], s1, b1, relu=True,
                              compute_dtype=compute_dtype)
    else:
        y1 = conv3x3_im2col(x, params["w1"], s1, b1, stride=stride, relu=True,
                            compute_dtype=compute_dtype)
    # y1: (N, Ho, Wo, planes) in compute_dtype

    # conv2 (3x3, stride 1) + bn2 + shortcut + relu (preact only if is_last)
    s2, b2 = _fold_bn(*params["bn2"])
    if has_shortcut:
        ssc, bsc = _fold_bn(*params["bnsc"])
        wsc = params["wsc"][:, :, 0, 0].T * ssc[None, :]     # (Cin, Cout), scaled
        xs = x[:, ::stride, ::stride, :]
        res = fused_conv3x3_s1(y1, params["w2"], s2, b2 + bsc,
                               xs=xs, wsc=wsc, relu=True,
                               emit_preact=is_last, compute_dtype=compute_dtype)
    else:
        res = fused_conv3x3_s1(y1, params["w2"], s2, b2,
                               residual=x, relu=True,
                               emit_preact=is_last, compute_dtype=compute_dtype)

    def to_nchw(t):
        return jnp.transpose(t, (0, 3, 1, 2))

    if is_last:
        out, pre = res
        return to_nchw(out), to_nchw(pre)
    return to_nchw(res)


# ------------------------- pure-JAX reference --------------------------------

def _ref_forward(x, params, *, stride, is_last, eps=1e-5):
    def conv(x, w, s, pad):
        return jax.lax.conv_general_dilated(
            x, w, (s, s), [(pad, pad), (pad, pad)],
            dimension_numbers=("NCHW", "OIHW", "NCHW"))

    def bn(x, stats):
        g, b, m, v = stats
        sc = (g / jnp.sqrt(v + eps))
        return x * sc[None, :, None, None] + (b - m * sc)[None, :, None, None]

    in_planes = x.shape[1]
    planes = params["w1"].shape[0]
    out = jax.nn.relu(bn(conv(x, params["w1"], stride, 1), params["bn1"]))
    out = bn(conv(out, params["w2"], 1, 1), params["bn2"])
    if (stride != 1) or (in_planes != planes):
        sc = bn(conv(x, params["wsc"], stride, 0), params["bnsc"])
    else:
        sc = x
    pre = out + sc
    o = jax.nn.relu(pre)
    return (o, pre) if is_last else o


# --------------------------------- main ---------------------------------------

def _make_params(key, in_planes, planes, has_shortcut):
    ks = jax.random.split(key, 16)

    def bn_stats(k):
        k1, k2, k3, k4 = jax.random.split(k, 4)
        gamma = 1.0 + 0.1 * jax.random.normal(k1, (planes,), jnp.float32)
        beta = 0.1 * jax.random.normal(k2, (planes,), jnp.float32)
        mean = 0.1 * jax.random.normal(k3, (planes,), jnp.float32)
        var = jnp.abs(jax.random.normal(k4, (planes,), jnp.float32)) + 0.5
        return (gamma, beta, mean, var)

    params = {
        "w1": 0.1 * jax.random.normal(ks[0], (planes, in_planes, 3, 3), jnp.float32),
        "bn1": bn_stats(ks[1]),
        "w2": 0.1 * jax.random.normal(ks[2], (planes, planes, 3, 3), jnp.float32),
        "bn2": bn_stats(ks[3]),
    }
    if has_shortcut:
        params["wsc"] = 0.1 * jax.random.normal(
            ks[4], (planes, in_planes, 1, 1), jnp.float32)
        params["bnsc"] = bn_stats(ks[5])
    return params


if __name__ == "__main__":
    key = jax.random.PRNGKey(0)
    kx, kp, kx2, kp2 = jax.random.split(key, 4)

    # Config A: downsampling block (stride-2 conv1 via im2col matmul kernel,
    # fused 1x1-conv shortcut inside the conv2 kernel), is_last=True -> preact.
    N, in_planes, planes, H, W = 2, 4, 8, 16, 16
    x = jax.random.normal(kx, (N, in_planes, H, W), jnp.float32)
    params = _make_params(kp, in_planes, planes, True)
    ref_out, ref_pre = _ref_forward(x, params, stride=2, is_last=True)

    # bf16-operand / bf16-output MXU path (default / fast).
    out, pre = basic_block_forward(x, params, stride=2, is_last=True,
                                   compute_dtype=jnp.bfloat16)
    out = jax.block_until_ready(out)
    pre = jax.block_until_ready(pre)
    assert out.shape == ref_out.shape and pre.shape == ref_pre.shape
    assert jnp.allclose(out.astype(jnp.float32), ref_out, atol=5e-2, rtol=5e-2)
    assert jnp.allclose(pre.astype(jnp.float32), ref_pre, atol=5e-2, rtol=5e-2)

    # f32-operand path for a tight numerical check of the same kernels.
    out32, pre32 = basic_block_forward(x, params, stride=2, is_last=True,
                                       compute_dtype=jnp.float32)
    out32 = jax.block_until_ready(out32)
    assert jnp.allclose(out32, ref_out, atol=1e-4, rtol=1e-4)
    assert jnp.allclose(pre32, ref_pre, atol=1e-4, rtol=1e-4)

    # Config B: identity shortcut (stride=1, in==out planes), both convs go
    # through the fused in-VMEM-tap kernel; is_last=False so no preact output.
    x2 = jax.random.normal(kx2, (N, planes, H, W), jnp.float32)
    params2 = _make_params(kp2, planes, planes, False)
    ref2 = _ref_forward(x2, params2, stride=1, is_last=False)
    out2 = basic_block_forward(x2, params2, stride=1, is_last=False,
                               compute_dtype=jnp.bfloat16)
    out2 = jax.block_until_ready(out2)
    assert out2.shape == ref2.shape
    assert jnp.allclose(out2.astype(jnp.float32), ref2, atol=5e-2, rtol=5e-2)

    print("KERNEL_OK")
</pallas_src>

<mosaic_0001>
module attributes {stable_mosaic.version = 11 : i64} {
  func.func @_matmul_bias_act_kernel(%arg0: i32, %arg1: i32, %arg2: memref<128x128xbf16, #tpu.memory_space<vmem>>, %arg3: memref<128x128xbf16, #tpu.memory_space<vmem>>, %arg4: memref<1x128xf32, #tpu.memory_space<vmem>>, %arg5: memref<128x128xbf16, #tpu.memory_space<vmem>>) attributes {dimension_semantics = [#tpu.dimension_semantics<parallel>, #tpu.dimension_semantics<parallel>], iteration_bounds = array<i64: 1, 1>, scalar_prefetch = 0 : i64, scratch_operands = 0 : i64, tpu.core_type = #tpu.core_type<tc>, window_params = [{transform_indices = @transform_0, window_bounds = array<i64: 128, 128>}, {transform_indices = @transform_1, window_bounds = array<i64: 128, 128>}, {transform_indices = @transform_2, window_bounds = array<i64: 1, 128>}, {transform_indices = @transform_3, window_bounds = array<i64: 128, 128>}]} {
    %c0 = arith.constant 0 : index
    %c0_0 = arith.constant 0 : index
    %0 = vector.load %arg2[%c0, %c0_0] : memref<128x128xbf16, #tpu.memory_space<vmem>>, vector<128x128xbf16>
    %c0_1 = arith.constant 0 : index
    %c0_2 = arith.constant 0 : index
    %1 = vector.load %arg3[%c0_1, %c0_2] : memref<128x128xbf16, #tpu.memory_space<vmem>>, vector<128x128xbf16>
    %cst = arith.constant dense<0.000000e+00> : vector<128x128xf32>
    %2 = tpu.matmul %0, %1, %cst {dimension_numbers = #tpu.dot_dimension_numbers<[1], [0], [0], [1], [0, 0, 1, 1], [], []>} : vector<128x128xbf16>, vector<128x128xbf16>, vector<128x128xf32> -> vector<128x128xf32>
    %c0_3 = arith.constant 0 : index
    %c0_4 = arith.constant 0 : index
    %3 = vector.load %arg4[%c0_3, %c0_4] : memref<1x128xf32, #tpu.memory_space<vmem>>, vector<1x128xf32>
    %4 = vector.broadcast %3 : vector<1x128xf32> to vector<128x128xf32>
    %5 = arith.addf %2, %4 : vector<128x128xf32>
    %cst_5 = arith.constant 0.000000e+00 : f32
    %6 = vector.broadcast %cst_5 : f32 to vector<128x128xf32>
    %7 = arith.maximumf %5, %6 : vector<128x128xf32>
    %8 = arith.truncf %7 : vector<128x128xf32> to vector<128x128xbf16>
    %c0_6 = arith.constant 0 : index
    %c0_7 = arith.constant 0 : index
    %9 = vector.load %arg5[%c0_6, %c0_7] : memref<128x128xbf16, #tpu.memory_space<vmem>>, vector<128x128xbf16>
    tpu.vector_store %arg5[%c0_6, %c0_7], %8 {strides = array<i32>} : memref<128x128xbf16, #tpu.memory_space<vmem>>, vector<128x128xbf16>,
    return
  }
  func.func @transform_0(%arg0: i32, %arg1: i32) -> (i32, i32) {
    %c0_i32 = arith.constant 0 : i32
    %c0_i32_0 = arith.constant 0 : i32
    return %arg0, %c0_i32 : i32, i32
  }
  func.func @transform_1(%arg0: i32, %arg1: i32) -> (i32, i32) {
    %c0_i32 = arith.constant 0 : i32
    %c0_i32_0 = arith.constant 0 : i32
    return %c0_i32, %arg1 : i32, i32
  }
  func.func @transform_2(%arg0: i32, %arg1: i32) -> (i32, i32) {
    %c0_i32 = arith.constant 0 : i32
    %c0_i32_0 = arith.constant 0 : i32
    return %c0_i32, %arg1 : i32, i32
  }
  func.func @transform_3(%arg0: i32, %arg1: i32) -> (i32, i32) {
    %c0_i32 = arith.constant 0 : i32
    return %arg0, %arg1 : i32, i32
  }
}

module attributes {stable_mosaic.version = 11 : i64} {
  func.func @_conv3x3_s1_kernel(%arg0: i32, %arg1: i32, %arg2: i32, %arg3: memref<1x8x16x128xbf16, #tpu.memory_space<vmem>>, %arg4: memref<1x8x16x128xbf16, #tpu.memory_space<vmem>>, %arg5: memref<3x3x128x128xbf16, #tpu.memory_space<vmem>>, %arg6: memref<1x128xf32, #tpu.memory_space<vmem>>, %arg7: memref<1x8x8x128xbf16, #tpu.memory_space<vmem>>, %arg8: memref<128x128xbf16, #tpu.memory_space<vmem>>, %arg9: memref<1x8x8x128xbf16, #tpu.memory_space<vmem>>, %arg10: memref<1x8x8x128xbf16, #tpu.memory_space<vmem>>) attributes {dimension_semantics = [#tpu.dimension_semantics<parallel>, #tpu.dimension_semantics<parallel>, #tpu.dimension_semantics<parallel>], iteration_bounds = array<i64: 2, 1, 1>, scalar_prefetch = 0 : i64, scratch_operands = 0 : i64, tpu.core_type = #tpu.core_type<tc>, window_params = [{transform_indices = @transform_0, window_bounds = array<i64: 1, 8, 16, 128>}, {transform_indices = @transform_1, window_bounds = array<i64: 1, 8, 16, 128>}, {transform_indices = @transform_2, window_bounds = array<i64: 3, 3, 128, 128>}, {transform_indices = @transform_3, window_bounds = array<i64: 1, 128>}, {transform_indices = @transform_4, window_bounds = array<i64: 1, 8, 8, 128>}, {transform_indices = @transform_5, window_bounds = array<i64: 128, 128>}, {transform_indices = @transform_6, window_bounds = array<i64: 1, 8, 8, 128>}, {transform_indices = @transform_7, window_bounds = array<i64: 1, 8, 8, 128>}]} {
    %c0 = arith.constant 0 : index
    %c0_0 = arith.constant 0 : index
    %c0_1 = arith.constant 0 : index
    %c0_2 = arith.constant 0 : index
    %0 = vector.load %arg3[%c0, %c0_0, %c0_1, %c0_2] : memref<1x8x16x128xbf16, #tpu.memory_space<vmem>>, vector<1x8x16x128xbf16>
    %1 = vector.shape_cast %0 : vector<1x8x16x128xbf16> to vector<8x16x128xbf16>
    %c0_3 = arith.constant 0 : index
    %c0_4 = arith.constant 0 : index
    %c0_5 = arith.constant 0 : index
    %c0_6 = arith.constant 0 : index
    %2 = vector.load %arg4[%c0_3, %c0_4, %c0_5, %c0_6] : memref<1x8x16x128xbf16, #tpu.memory_space<vmem>>, vector<1x8x16x128xbf16>
    %3 = vector.shape_cast %2 : vector<1x8x16x128xbf16> to vector<8x16x128xbf16>
    %4 = tpu.concatenate %1, %3 in 0 : vector<8x16x128xbf16>, vector<8x16x128xbf16> -> vector<16x16x128xbf16>
    %5 = vector.extract_strided_slice %4 {offsets = [0, 0, 0], sizes = [8, 8, 128], strides = [1, 1, 1]} : vector<16x16x128xbf16> to vector<8x8x128xbf16>
    %6 = vector.shape_cast %5 : vector<8x8x128xbf16> to vector<64x128xbf16>
    %c0_7 = arith.constant 0 : index
    %c0_8 = arith.constant 0 : index
    %c0_9 = arith.constant 0 : index
    %c0_10 = arith.constant 0 : index
    %7 = vector.load %arg5[%c0_7, %c0_8, %c0_9, %c0_10] : memref<3x3x128x128xbf16, #tpu.memory_space<vmem>>, vector<1x1x128x128xbf16>
    %8 = vector.shape_cast %7 : vector<1x1x128x128xbf16> to vector<128x128xbf16>
    %cst = arith.constant dense<0.000000e+00> : vector<64x128xf32>
    %9 = tpu.matmul %6, %8, %cst {dimension_numbers = #tpu.dot_dimension_numbers<[1], [0], [0], [1], [0, 0, 1, 1], [], []>} : vector<64x128xbf16>, vector<128x128xbf16>, vector<64x128xf32> -> vector<64x128xf32>
    %10 = vector.extract_strided_slice %4 {offsets = [0, 1, 0], sizes = [8, 8, 128], strides = [1, 1, 1]} : vector<16x16x128xbf16> to vector<8x8x128xbf16>
    %11 = vector.shape_cast %10 : vector<8x8x128xbf16> to vector<64x128xbf16>
    %c0_11 = arith.constant 0 : index
    %c1 = arith.constant 1 : index
    %c0_12 = arith.constant 0 : index
    %c0_13 = arith.constant 0 : index
    %12 = vector.load %arg5[%c0_11, %c1, %c0_12, %c0_13] : memref<3x3x128x128xbf16, #tpu.memory_space<vmem>>, vector<1x1x128x128xbf16>
    %13 = vector.shape_cast %12 : vector<1x1x128x128xbf16> to vector<128x128xbf16>
    %cst_14 = arith.constant dense<0.000000e+00> : vector<64x128xf32>
    %14 = tpu.matmul %11, %13, %cst_14 {dimension_numbers = #tpu.dot_dimension_numbers<[1], [0], [0], [1], [0, 0, 1, 1], [], []>} : vector<64x128xbf16>, vector<128x128xbf16>, vector<64x128xf32> -> vector<64x128xf32>
    %15 = arith.addf %9, %14 : vector<64x128xf32>
    %16 = vector.extract_strided_slice %4 {offsets = [0, 2, 0], sizes = [8, 8, 128], strides = [1, 1, 1]} : vector<16x16x128xbf16> to vector<8x8x128xbf16>
    %17 = vector.shape_cast %16 : vector<8x8x128xbf16> to vector<64x128xbf16>
    %c0_15 = arith.constant 0 : index
    %c2 = arith.constant 2 : index
    %c0_16 = arith.constant 0 : index
    %c0_17 = arith.constant 0 : index
    %18 = vector.load %arg5[%c0_15, %c2, %c0_16, %c0_17] : memref<3x3x128x128xbf16, #tpu.memory_space<vmem>>, vector<1x1x128x128xbf16>
    %19 = vector.shape_cast %18 : vector<1x1x128x128xbf16> to vector<128x128xbf16>
    %cst_18 = arith.constant dense<0.000000e+00> : vector<64x128xf32>
    %20 = tpu.matmul %17, %19, %cst_18 {dimension_numbers = #tpu.dot_dimension_numbers<[1], [0], [0], [1], [0, 0, 1, 1], [], []>} : vector<64x128xbf16>, vector<128x128xbf16>, vector<64x128xf32> -> vector<64x128xf32>
    %21 = arith.addf %15, %20 : vector<64x128xf32>
    %22 = vector.extract_strided_slice %4 {offsets = [1, 0, 0], sizes = [8, 8, 128], strides = [1, 1, 1]} : vector<16x16x128xbf16> to vector<8x8x128xbf16>
    %23 = vector.shape_cast %22 : vector<8x8x128xbf16> to vector<64x128xbf16>
    %c1_19 = arith.constant 1 : index
    %c0_20 = arith.constant 0 : index
    %c0_21 = arith.constant 0 : index
    %c0_22 = arith.constant 0 : index
    %24 = vector.load %arg5[%c1_19, %c0_20, %c0_21, %c0_22] : memref<3x3x128x128xbf16, #tpu.memory_space<vmem>>, vector<1x1x128x128xbf16>
    %25 = vector.shape_cast %24 : vector<1x1x128x128xbf16> to vector<128x128xbf16>
    %cst_23 = arith.constant dense<0.000000e+00> : vector<64x128xf32>
    %26 = tpu.matmul %23, %25, %cst_23 {dimension_numbers = #tpu.dot_dimension_numbers<[1], [0], [0], [1], [0, 0, 1, 1], [], []>} : vector<64x128xbf16>, vector<128x128xbf16>, vector<64x128xf32> -> vector<64x128xf32>
    %27 = arith.addf %21, %26 : vector<64x128xf32>
    %28 = vector.extract_strided_slice %4 {offsets = [1, 1, 0], sizes = [8, 8, 128], strides = [1, 1, 1]} : vector<16x16x128xbf16> to vector<8x8x128xbf16>
    %29 = vector.shape_cast %28 : vector<8x8x128xbf16> to vector<64x128xbf16>
    %c1_24 = arith.constant 1 : index
    %c1_25 = arith.constant 1 : index
    %c0_26 = arith.constant 0 : index
    %c0_27 = arith.constant 0 : index
    %30 = vector.load %arg5[%c1_24, %c1_25, %c0_26, %c0_27] : memref<3x3x128x128xbf16, #tpu.memory_space<vmem>>, vector<1x1x128x128xbf16>
    %31 = vector.shape_cast %30 : vector<1x1x128x128xbf16> to vector<128x128xbf16>
    %cst_28 = arith.constant dense<0.000000e+00> : vector<64x128xf32>
    %32 = tpu.matmul %29, %31, %cst_28 {dimension_numbers = #tpu.dot_dimension_numbers<[1], [0], [0], [1], [0, 0, 1, 1], [], []>} : vector<64x128xbf16>, vector<128x128xbf16>, vector<64x128xf32> -> vector<64x128xf32>
    %33 = arith.addf %27, %32 : vector<64x128xf32>
    %34 = vector.extract_strided_slice %4 {offsets = [1, 2, 0], sizes = [8, 8, 128], strides = [1, 1, 1]} : vector<16x16x128xbf16> to vector<8x8x128xbf16>
    %35 = vector.shape_cast %34 : vector<8x8x128xbf16> to vector<64x128xbf16>
    %c1_29 = arith.constant 1 : index
    %c2_30 = arith.constant 2 : index
    %c0_31 = arith.constant 0 : index
    %c0_32 = arith.constant 0 : index
    %36 = vector.load %arg5[%c1_29, %c2_30, %c0_31, %c0_32] : memref<3x3x128x128xbf16, #tpu.memory_space<vmem>>, vector<1x1x128x128xbf16>
    %37 = vector.shape_cast %36 : vector<1x1x128x128xbf16> to vector<128x128xbf16>
    %cst_33 = arith.constant dense<0.000000e+00> : vector<64x128xf32>
    %38 = tpu.matmul %35, %37, %cst_33 {dimension_numbers = #tpu.dot_dimension_numbers<[1], [0], [0], [1], [0, 0, 1, 1], [], []>} : vector<64x128xbf16>, vector<128x128xbf16>, vector<64x128xf32> -> vector<64x128xf32>
    %39 = arith.addf %33, %38 : vector<64x128xf32>
    %40 = vector.extract_strided_slice %4 {offsets = [2, 0, 0], sizes = [8, 8, 128], strides = [1, 1, 1]} : vector<16x16x128xbf16> to vector<8x8x128xbf16>
    %41 = vector.shape_cast %40 : vector<8x8x128xbf16> to vector<64x128xbf16>
    %c2_34 = arith.constant 2 : index
    %c0_35 = arith.constant 0 : index
    %c0_36 = arith.constant 0 : index
    %c0_37 = arith.constant 0 : index
    %42 = vector.load %arg5[%c2_34, %c0_35, %c0_36, %c0_37] : memref<3x3x128x128xbf16, #tpu.memory_space<vmem>>, vector<1x1x128x128xbf16>
    %43 = vector.shape_cast %42 : vector<1x1x128x128xbf16> to vector<128x128xbf16>
    %cst_38 = arith.constant dense<0.000000e+00> : vector<64x128xf32>
    %44 = tpu.matmul %41, %43, %cst_38 {dimension_numbers = #tpu.dot_dimension_numbers<[1], [0], [0], [1], [0, 0, 1, 1], [], []>} : vector<64x128xbf16>, vector<128x128xbf16>, vector<64x128xf32> -> vector<64x128xf32>
    %45 = arith.addf %39, %44 : vector<64x128xf32>
    %46 = vector.extract_strided_slice %4 {offsets = [2, 1, 0], sizes = [8, 8, 128], strides = [1, 1, 1]} : vector<16x16x128xbf16> to vector<8x8x128xbf16>
    %47 = vector.shape_cast %46 : vector<8x8x128xbf16> to vector<64x128xbf16>
    %c2_39 = arith.constant 2 : index
    %c1_40 = arith.constant 1 : index
    %c0_41 = arith.constant 0 : index
    %c0_42 = arith.constant 0 : index
    %48 = vector.load %arg5[%c2_39, %c1_40, %c0_41, %c0_42] : memref<3x3x128x128xbf16, #tpu.memory_space<vmem>>, vector<1x1x128x128xbf16>
    %49 = vector.shape_cast %48 : vector<1x1x128x128xbf16> to vector<128x128xbf16>
    %cst_43 = arith.constant dense<0.000000e+00> : vector<64x128xf32>
    %50 = tpu.matmul %47, %49, %cst_43 {dimension_numbers = #tpu.dot_dimension_numbers<[1], [0], [0], [1], [0, 0, 1, 1], [], []>} : vector<64x128xbf16>, vector<128x128xbf16>, vector<64x128xf32> -> vector<64x128xf32>
    %51 = arith.addf %45, %50 : vector<64x128xf32>
    %52 = vector.extract_strided_slice %4 {offsets = [2, 2, 0], sizes = [8, 8, 128], strides = [1, 1, 1]} : vector<16x16x128xbf16> to vector<8x8x128xbf16>
    %53 = vector.shape_cast %52 : vector<8x8x128xbf16> to vector<64x128xbf16>
    %c2_44 = arith.constant 2 : index
    %c2_45 = arith.constant 2 : index
    %c0_46 = arith.constant 0 : index
    %c0_47 = arith.constant 0 : index
    %54 = vector.load %arg5[%c2_44, %c2_45, %c0_46, %c0_47] : memref<3x3x128x128xbf16, #tpu.memory_space<vmem>>, vector<1x1x128x128xbf16>
    %55 = vector.shape_cast %54 : vector<1x1x128x128xbf16> to vector<128x128xbf16>
    %cst_48 = arith.constant dense<0.000000e+00> : vector<64x128xf32>
    %56 = tpu.matmul %53, %55, %cst_48 {dimension_numbers = #tpu.dot_dimension_numbers<[1], [0], [0], [1], [0, 0, 1, 1], [], []>} : vector<64x128xbf16>, vector<128x128xbf16>, vector<64x128xf32> -> vector<64x128xf32>
    %57 = arith.addf %51, %56 : vector<64x128xf32>
    %c0_49 = arith.constant 0 : index
    %c0_50 = arith.constant 0 : index
    %c0_51 = arith.constant 0 : index
    %c0_52 = arith.constant 0 : index
    %58 = vector.load %arg7[%c0_49, %c0_50, %c0_51, %c0_52] : memref<1x8x8x128xbf16, #tpu.memory_space<vmem>>, vector<1x8x8x128xbf16>
    %59 = vector.shape_cast %58 : vector<1x8x8x128xbf16> to vector<8x8x128xbf16>
    %60 = vector.shape_cast %59 : vector<8x8x128xbf16> to vector<64x128xbf16>
    %c0_53 = arith.constant 0 : index
    %c0_54 = arith.constant 0 : index
    %61 = vector.load %arg8[%c0_53, %c0_54] : memref<128x128xbf16, #tpu.memory_space<vmem>>, vector<128x128xbf16>
    %cst_55 = arith.constant dense<0.000000e+00> : vector<64x128xf32>
    %62 = tpu.matmul %60, %61, %cst_55 {dimension_numbers = #tpu.dot_dimension_numbers<[1], [0], [0], [1], [0, 0, 1, 1], [], []>} : vector<64x128xbf16>, vector<128x128xbf16>, vector<64x128xf32> -> vector<64x128xf32>
    %63 = arith.addf %57, %62 : vector<64x128xf32>
    %c0_56 = arith.constant 0 : index
    %c0_57 = arith.constant 0 : index
    %64 = vector.load %arg6[%c0_56, %c0_57] : memref<1x128xf32, #tpu.memory_space<vmem>>, vector<1x128xf32>
    %65 = vector.broadcast %64 : vector<1x128xf32> to vector<64x128xf32>
    %66 = arith.addf %63, %65 : vector<64x128xf32>
    %67 = vector.shape_cast %66 : vector<64x128xf32> to vector<8x8x128xf32>
    %68 = arith.truncf %67 : vector<8x8x128xf32> to vector<8x8x128xbf16>
    %c0_58 = arith.constant 0 : index
    %c0_59 = arith.constant 0 : index
    %c0_60 = arith.constant 0 : index
    %c0_61 = arith.constant 0 : index
    %69 = vector.load %arg10[%c0_58, %c0_59, %c0_60, %c0_61] : memref<1x8x8x128xbf16, #tpu.memory_space<vmem>>, vector<1x8x8x128xbf16>
    %70 = vector.shape_cast %69 : vector<1x8x8x128xbf16> to vector<8x8x128xbf16>
    %71 = vector.shape_cast %68 : vector<8x8x128xbf16> to vector<1x8x8x128xbf16>
    tpu.vector_store %arg10[%c0_58, %c0_59, %c0_60, %c0_61], %71 {strides = array<i32>} : memref<1x8x8x128xbf16, #tpu.memory_space<vmem>>, vector<1x8x8x128xbf16>,
    %cst_62 = arith.constant 0.000000e+00 : f32
    %72 = vector.broadcast %cst_62 : f32 to vector<64x128xf32>
    %73 = arith.maximumf %66, %72 : vector<64x128xf32>
    %74 = vector.shape_cast %73 : vector<64x128xf32> to vector<8x8x128xf32>
    %75 = arith.truncf %74 : vector<8x8x128xf32> to vector<8x8x128xbf16>
    %c0_63 = arith.constant 0 : index
    %c0_64 = arith.constant 0 : index
    %c0_65 = arith.constant 0 : index
    %c0_66 = arith.constant 0 : index
    %76 = vector.load %arg9[%c0_63, %c0_64, %c0_65, %c0_66] : memref<1x8x8x128xbf16, #tpu.memory_space<vmem>>, vector<1x8x8x128xbf16>
    %77 = vector.shape_cast %76 : vector<1x8x8x128xbf16> to vector<8x8x128xbf16>
    %78 = vector.shape_cast %75 : vector<8x8x128xbf16> to vector<1x8x8x128xbf16>
    tpu.vector_store %arg9[%c0_63, %c0_64, %c0_65, %c0_66], %78 {strides = array<i32>} : memref<1x8x8x128xbf16, #tpu.memory_space<vmem>>, vector<1x8x8x128xbf16>,
    return
  }
  func.func @transform_0(%arg0: i32, %arg1: i32, %arg2: i32) -> (i32, i32, i32, i32) {
    %c0_i32 = arith.constant 0 : i32
    %c0_i32_0 = arith.constant 0 : i32
    %c0_i32_1 = arith.constant 0 : i32
    return %arg0, %arg1, %c0_i32, %c0_i32_0 : i32, i32, i32, i32
  }
  func.func @transform_1(%arg0: i32, %arg1: i32, %arg2: i32) -> (i32, i32, i32, i32) {
    %c1_i32 = arith.constant 1 : i32
    %0 = arith.addi %arg1, %c1_i32 : i32
    %c1_i32_0 = arith.constant 1 : i32
    %1 = arith.muli %0, %c1_i32_0 : i32
    %c0_i32 = arith.constant 0 : i32
    %c0_i32_1 = arith.constant 0 : i32
    %c0_i32_2 = arith.constant 0 : i32
    return %arg0, %1, %c0_i32, %c0_i32_1 : i32, i32, i32, i32
  }
  func.func @transform_2(%arg0: i32, %arg1: i32, %arg2: i32) -> (i32, i32, i32, i32) {
    %c0_i32 = arith.constant 0 : i32
    %c0_i32_0 = arith.constant 0 : i32
    %c0_i32_1 = arith.constant 0 : i32
    %c0_i32_2 = arith.constant 0 : i32
    return %c0_i32, %c0_i32_0, %c0_i32_1, %arg2 : i32, i32, i32, i32
  }
  func.func @transform_3(%arg0: i32, %arg1: i32, %arg2: i32) -> (i32, i32) {
    %c0_i32 = arith.constant 0 : i32
    %c0_i32_0 = arith.constant 0 : i32
    return %c0_i32, %arg2 : i32, i32
  }
  func.func @transform_4(%arg0: i32, %arg1: i32, %arg2: i32) -> (i32, i32, i32, i32) {
    %c0_i32 = arith.constant 0 : i32
    %c0_i32_0 = arith.constant 0 : i32
    %c0_i32_1 = arith.constant 0 : i32
    return %arg0, %arg1, %c0_i32, %c0_i32_0 : i32, i32, i32, i32
  }
  func.func @transform_5(%arg0: i32, %arg1: i32, %arg2: i32) -> (i32, i32) {
    %c0_i32 = arith.constant 0 : i32
    %c0_i32_0 = arith.constant 0 : i32
    return %c0_i32, %arg2 : i32, i32
  }
  func.func @transform_6(%arg0: i32, %arg1: i32, %arg2: i32) -> (i32, i32, i32, i32) {
    %c0_i32 = arith.constant 0 : i32
    %c0_i32_0 = arith.constant 0 : i32
    return %arg0, %arg1, %c0_i32, %arg2 : i32, i32, i32, i32
  }
  func.func @transform_7(%arg0: i32, %arg1: i32, %arg2: i32) -> (i32, i32, i32, i32) {
    %c0_i32 = arith.constant 0 : i32
    %c0_i32_0 = arith.constant 0 : i32
    return %arg0, %arg1, %c0_i32, %arg2 : i32, i32, i32, i32
  }
}

</mosaic_0001>

<bundles_post_ra>
// kernel: basic_block_forward.2
= control target key start
LH: loop header
LB: loop body
LE: loop exit
PB: predicated region body
PF: predicated region fallthrough
CT: control target
= control target key end

     0   :  { %s618_s1 = inlined_call_operand.vmem [shape: bf16[128,128], index: 1, kind: input, shape index: {}]   ;;  %s619_s0 = inlined_call_operand.vmem [shape: bf16[128,128], index: 0, kind: input, shape index: {}]   ;;  %s620_s2 = inlined_call_operand.vmem [shape: f32[1,128], index: 2, kind: input, shape index: {}]   ;;  %s621_s3 = inlined_call_operand.vmem [shape: bf16[128,128], index: 3, kind: output, shape index: {}]  }
   0x1   :  { %v507_v0 = vld [vmem:[%s618_s1] sm:$0xff]   ;;  %v508_v1 = vld [vmem:[%s618_s1 + $0x8] sm:$0xff]   ;;  %v509_v2 = vld [vmem:[%s618_s1 + $0x10] sm:$0xff]  }
   0x2   :  { %459 = vmatprep.subr.bf16.mxu0 %v507_v0  ;;  %491 = vmatprep.subr.bf16.mxu1 %v507_v0  ;;  %v510_v3 = vld [vmem:[%s618_s1 + $0x18] sm:$0xff]   ;;  %v515_v4 = vld [vmem:[%s619_s0] sm:$0xff]   ;;  %v512_v7 = vld [vmem:[%s618_s1 + $0x28] sm:$0xff]  }
   0x3   :  { %460 = vmatpush3.bf16.msra.mxu0 %v507_v0  ;;  %499 = vmatpush3.bf16.msra.mxu1 %v507_v0  ;;  %v516_v5 = vld [vmem:[%s619_s0 + $0x20] sm:$0xff]   ;;  %v513_v8 = vld [vmem:[%s618_s1 + $0x30] sm:$0xff]   ;;  %v514_v9 = vld [vmem:[%s618_s1 + $0x38] sm:$0xff]  }
   0x4   :  { %461 = vmatprep.subr.bf16.mxu0 %v508_v1  ;;  %492 = vmatprep.subr.bf16.mxu1 %v508_v1  ;;  %v511_v6 = vld [vmem:[%s618_s1 + $0x20] sm:$0xff]   ;;  %v517_v10 = vld [vmem:[%s619_s0 + $0x8] sm:$0xff]   ;;  %v519_v12 = vld [vmem:[%s619_s0 + $0x10] sm:$0xff]  }
   0x5   :  { %475 = vmatprep.mubr.bf16.mxu0 %v515_v4  ;;  %483 = vmatprep.mubr.bf16.mxu1 %v516_v5  ;;  %v518_v11 = vld [vmem:[%s619_s0 + $0x28] sm:$0xff]   ;;  %v520_v13 = vld [vmem:[%s619_s0 + $0x30] sm:$0xff]   ;;  %v521_v14 = vld [vmem:[%s619_s0 + $0x18] sm:$0xff]  }
   0x6   :  { %v522_v15 = vld [vmem:[%s619_s0 + $0x38] sm:$0xff]   ;;  %v347_v16 = vld [vmem:[%s620_s2] ss:$0 sm:$0xff] }
   0x7   :  { %462 = vmatpush3.bf16.msra.mxu0 %v508_v1  ;;  %500 = vmatpush3.bf16.msra.mxu1 %v508_v1 }
   0x8   :  { %463 = vmatprep.subr.bf16.mxu0 %v509_v2  ;;  %493 = vmatprep.subr.bf16.mxu1 %v509_v2 }
   0xb   :  { %464 = vmatpush3.bf16.msra.mxu0 %v509_v2  ;;  %501 = vmatpush3.bf16.msra.mxu1 %v509_v2 }
   0xc   :  { %465 = vmatprep.subr.bf16.mxu0 %v510_v3  ;;  %494 = vmatprep.subr.bf16.mxu1 %v510_v3 }
   0xf   :  { %466 = vmatpush3.bf16.msra.mxu0 %v510_v3  ;;  %502 = vmatpush3.bf16.msra.mxu1 %v510_v3 }
  0x10   :  { %467 = vmatprep.subr.bf16.mxu0 %v511_v6  ;;  %495 = vmatprep.subr.bf16.mxu1 %v511_v6 }
  0x13   :  { %468 = vmatpush3.bf16.msra.mxu0 %v511_v6  ;;  %503 = vmatpush3.bf16.msra.mxu1 %v511_v6 }
  0x14   :  { %469 = vmatprep.subr.bf16.mxu0 %v512_v7  ;;  %496 = vmatprep.subr.bf16.mxu1 %v512_v7 }
  0x17   :  { %470 = vmatpush3.bf16.msra.mxu0 %v512_v7  ;;  %504 = vmatpush3.bf16.msra.mxu1 %v512_v7 }
  0x18   :  { %471 = vmatprep.subr.bf16.mxu0 %v513_v8  ;;  %497 = vmatprep.subr.bf16.mxu1 %v513_v8 }
  0x1b   :  { %472 = vmatpush3.bf16.msra.mxu0 %v513_v8  ;;  %505 = vmatpush3.bf16.msra.mxu1 %v513_v8 }
  0x1c   :  { %473 = vmatprep.subr.bf16.mxu0 %v514_v9  ;;  %498 = vmatprep.subr.bf16.mxu1 %v514_v9 }
  0x1f   :  { %474 = vmatpush3.bf16.msra.mxu0 %v514_v9  ;;  %506 = vmatpush3.bf16.msra.mxu1 %v514_v9 }
  0x22   :  { %476 = vmatmul.mubr.bf16.vlgmr.msra.gmra.mrb[0].mxu0 %v517_v10  ;;  %484 = vmatmul.mubr.bf16.vlgmr.msra.gmra.mrb[0].mxu1 %v518_v11 }
  0x23   :  { %479 = vmatprep.mubr.bf16.mxu0 %v519_v12  ;;  %487 = vmatprep.mubr.bf16.mxu1 %v520_v13 }
  0x2a   :  { %480 = vmatmul.mubr.bf16.gmra.mrb[4].mxu0 %v521_v14  ;;  %488 = vmatmul.mubr.bf16.gmra.mrb[4].mxu1 %v522_v15 }
  0xf5   :  { %v477_v17 = vpop.f32.mrb[0].mxu0  ;;  %v485_v18 = vpop.f32.mrb[0].mxu1 }
  0xf6   :  { %v193_v19 = vadd.f32 %v477_v17, %v347_v16  ;;  %v225_v20 = vadd.f32 %v485_v18, %v347_v16  ;;  %v184_v21 = vpop.f32.mrb[1].mxu0  ;;  %v216_v22 = vpop.f32.mrb[1].mxu1 }
  0xf7   :  { %v185_v23 = vadd.f32 %v347_v16, %v184_v21  ;;  %v217_v24 = vadd.f32 %v347_v16, %v216_v22  ;;  %v478_v25 = vpop.f32.mrb[2].mxu0  ;;  %v486_v26 = vpop.f32.mrb[2].mxu1 }
  0xf8   :  { %v196_v27 = vadd.f32 %v478_v25, %v347_v16  ;;  %v228_v28 = vadd.f32 %v486_v26, %v347_v16  ;;  %v187_v29 = vpop.f32.mrb[3].mxu0  ;;  %v219_v30 = vpop.f32.mrb[3].mxu1  ;;  %v249_v33 = vmax.f32 %v193_v19, 0.0  ;;  %v257_v34 = vmax.f32 %v225_v20, 0.0 }
  0xf9   :  { %v188_v31 = vadd.f32 %v347_v16, %v187_v29  ;;  %v220_v32 = vadd.f32 %v347_v16, %v219_v30  ;;  %v247_v37 = vmax.f32 %v185_v23, 0.0  ;;  %v255_v38 = vmax.f32 %v217_v24, 0.0 }
  0xfa   :  { %v250_v35 = vmax.f32 %v196_v27, 0.0  ;;  %v258_v36 = vmax.f32 %v228_v28, 0.0 }
  0xfb   :  { %v248_v39 = vmax.f32 %v188_v31, 0.0  ;;  %v256_v40 = vmax.f32 %v220_v32, 0.0 }
  0xfc   :  { %v404_v41 = vpack.c.bf16 %v250_v35, %v249_v33  ;;  %v424_v42 = vpack.c.bf16 %v258_v36, %v257_v34 }
  0xfd   :  { %v399_v43 = vpack.c.bf16 %v248_v39, %v247_v37  ;;  %v419_v44 = vpack.c.bf16 %v256_v40, %v255_v38  ;;  %v481_v45 = vpop.f32.mrb[4].mxu0  ;;  %v489_v46 = vpop.f32.mrb[4].mxu1 }
  0xfe   :  { %436 = vst [vmem:[%s621_s3 + $0x8] sm:$0xff] %v404_v41   ;;  %440 = vst [vmem:[%s621_s3 + $0x28] sm:$0xff] %v424_v42   ;;  %v209_v47 = vadd.f32 %v481_v45, %v347_v16  ;;  %v241_v48 = vadd.f32 %v489_v46, %v347_v16  ;;  %v200_v49 = vpop.f32.mrb[5].mxu0  ;;  %v232_v50 = vpop.f32.mrb[5].mxu1 }
  0xff   :  { %400 = vst [vmem:[%s621_s3] sm:$0xff] %v399_v43   ;;  %439 = vst [vmem:[%s621_s3 + $0x20] sm:$0xff] %v419_v44   ;;  %v201_v51 = vadd.f32 %v347_v16, %v200_v49  ;;  %v233_v52 = vadd.f32 %v347_v16, %v232_v50  ;;  %v482_v53 = vpop.f32.mrb[6].mxu0  ;;  %v490_v54 = vpop.f32.mrb[6].mxu1 }
 0x100   :  { %v212_v55 = vadd.f32 %v482_v53, %v347_v16  ;;  %v244_v56 = vadd.f32 %v490_v54, %v347_v16  ;;  %v203_v57 = vpop.f32.mrb[7].mxu0  ;;  %v235_v58 = vpop.f32.mrb[7].mxu1  ;;  %v253_v61 = vmax.f32 %v209_v47, 0.0  ;;  %v261_v62 = vmax.f32 %v241_v48, 0.0 }
 0x101   :  { %v204_v59 = vadd.f32 %v347_v16, %v203_v57  ;;  %v236_v60 = vadd.f32 %v347_v16, %v235_v58  ;;  %v251_v1 = vmax.f32 %v201_v51, 0.0  ;;  %v259_v2 = vmax.f32 %v233_v52, 0.0 }
 0x102   :  { %v254_v63 = vmax.f32 %v212_v55, 0.0  ;;  %v262_v0 = vmax.f32 %v244_v56, 0.0 }
 0x103   :  { %v252_v3 = vmax.f32 %v204_v59, 0.0  ;;  %v260_v4 = vmax.f32 %v236_v60, 0.0 }
 0x104   :  { %v414_v5 = vpack.c.bf16 %v254_v63, %v253_v61  ;;  %v434_v6 = vpack.c.bf16 %v262_v0, %v261_v62 }
 0x105   :  { %v409_v7 = vpack.c.bf16 %v252_v3, %v251_v1  ;;  %v429_v8 = vpack.c.bf16 %v260_v4, %v259_v2 }
 0x106   :  { %438 = vst [vmem:[%s621_s3 + $0x18] sm:$0xff] %v414_v5   ;;  %442 = vst [vmem:[%s621_s3 + $0x38] sm:$0xff] %v434_v6  }
 0x107   :  { %437 = vst [vmem:[%s621_s3 + $0x10] sm:$0xff] %v409_v7   ;;  %441 = vst [vmem:[%s621_s3 + $0x30] sm:$0xff] %v429_v8  }

// kernel: basic_block_forward.3
= control target key start
LH: loop header
LB: loop body
LE: loop exit
PB: predicated region body
PF: predicated region fallthrough
CT: control target
= control target key end

     0   :  { %s3437_s24 = smov 0   ;;  %s3439_s25 = smov 0   ;;  %s4012_s0 = inlined_call_operand.vmem [shape: bf16[2,16,16,128], index: 0, kind: input, shape index: {}, may-alias: {0,1}]   ;;  %s4013_s1 = inlined_call_operand.vmem [shape: bf16[2,16,16,128], index: 1, kind: input, shape index: {}, may-alias: {0,1}]   ;;  %s4014_s2 = inlined_call_operand.vmem [shape: bf16[3,3,128,128], index: 2, kind: input, shape index: {}]   ;;  %s4015_s3 = inlined_call_operand.vmem [shape: f32[1,128], index: 3, kind: input, shape index: {}]   ;;  %s4016_s4 = inlined_call_operand.vmem [shape: bf16[2,8,8,128], index: 4, kind: input, shape index: {}]   ;;  %s4017_s5 = inlined_call_operand.vmem [shape: bf16[128,128], index: 5, kind: input, shape index: {}]   ;;  %s4018_s6 = inlined_call_operand.vmem [shape: bf16[2,8,8,128], index: 6, kind: output, shape index: {0}]   ;;  %s4019_s7 = inlined_call_operand.vmem [shape: bf16[2,8,8,128], index: 7, kind: output, shape index: {1}]  }
   0x1   :  { %s3441_s26 = smov 0  }
   0x2 LB: > { %s37_s27 = sadd.s32 1, %s3391_s25  ;;  %p2509_p0 = scmp.ge.s32.totalorder %s3395_s26, 1  ;;  %s3395_s26 = sphi %s3441_s26, %s18_s26   ;;  %s3391_s25 = sphi %s3439_s25, %s4025_s25   ;;  %s3387_s24 = sphi %s3437_s24, %s4024_s24  }
   0x3   : > { %p39_p1 = scmp.ge.s32.totalorder %s37_s27, 2  ;;  %p340_p2 = scmp.lt.s32.totalorder %s3395_s26, 3 }
   0x5   : > { %s4027_s27 = smov (%p39_p1, %s37_s27), 0  ;;  %p341_p3 = pnand %p2509_p0, %p340_p2 }
   0x6   : > { %v3281_v0 = vld [vmem:[%s4014_s2 + $0x40] sm:$0xff] (!%p341_p3)   ;;  %v3283_v2 = vld [vmem:[%s4014_s2 + $0x48] sm:$0xff] (!%p341_p3)   ;;  %p428_p4 = scmp.lt.s32.totalorder (!%p341_p3), %s3387_s24, 1  ;;  %v3285_v4 = vld [vmem:[%s4014_s2 + $0x50] sm:$0xff] (!%p341_p3)   ;;  %vm941_vm0 = vcmask (!%p341_p3), 1042432   ;;  %vm942_vm3 = vcmask (!%p341_p3), 1046532  }
   0x7   : > { %344 = sbr.rel (%p341_p3) target bundleno = 402 (0x192), region = 44  ;;  %v3282_v1 = vld [vmem:[%s4014_s2 + $0x140] sm:$0xff] (!%p341_p3)   ;;  %2945 = vmatprep.subr.bf16.mxu1 (!%p341_p3), %v3281_v0  ;;  %v3284_v3 = vld [vmem:[%s4014_s2 + $0x148] sm:$0xff] (!%p341_p3)   ;;  %v3286_v5 = vld [vmem:[%s4014_s2 + $0x150] sm:$0xff] (!%p341_p3)   ;;  %vm535_vm1 = vsmask.f32 (!%p341_p3), 3328 }
   0x8   : > { %3065 = vmatprep.subr.bf16.mxu0 (!%p341_p3), %v3282_v1  ;;  %2946 = vmatpush3.bf16.msra.mxu1 (!%p341_p3), %v3281_v0  ;;  %v3287_v6 = vld [vmem:[%s4014_s2 + $0x58] sm:$0xff] (!%p341_p3)   ;;  %v3289_v8 = vld [vmem:[%s4014_s2 + $0x60] sm:$0xff] (!%p341_p3)   ;;  %v3291_v10 = vld [vmem:[%s4014_s2 + $0x68] sm:$0xff] (!%p341_p3)   ;;  %vm536_vm2 = vsmask.f32 (!%p341_p3), 7440 }
   0x9   : > { %3066 = vmatpush3.bf16.msra.mxu0 (!%p341_p3), %v3282_v1  ;;  %2947 = vmatprep.subr.bf16.mxu1 (!%p341_p3), %v3283_v2  ;;  %v3288_v7 = vld [vmem:[%s4014_s2 + $0x158] sm:$0xff] (!%p341_p3)   ;;  %v3290_v9 = vld [vmem:[%s4014_s2 + $0x160] sm:$0xff] (!%p341_p3)   ;;  %v3292_v11 = vld [vmem:[%s4014_s2 + $0x168] sm:$0xff] (!%p341_p3)  }
   0xa   : > { %3067 = vmatprep.subr.bf16.mxu0 (!%p341_p3), %v3284_v3  ;;  %v3293_v18 = vld [vmem:[%s4014_s2 + $0x70] sm:$0xff] (!%p341_p3)   ;;  %v3295_v33 = vld [vmem:[%s4014_s2 + $0x78] sm:$0xff] (!%p341_p3)   ;;  %vm3539_vm4 = vmor (!%p341_p3), %vm535_vm1, %vm536_vm2 }
   0xb   : > { %v3294_v29 = vld [vmem:[%s4014_s2 + $0x170] sm:$0xff] (!%p341_p3)   ;;  %v3296_v38 = vld [vmem:[%s4014_s2 + $0x178] sm:$0xff] (!%p341_p3)   ;;  %vm3550_vm5 = vmor (!%p341_p3), %vm941_vm0, %vm942_vm3 }
   0xc   : > { %2948 = vmatpush3.bf16.msra.mxu1 (!%p341_p3), %v3283_v2  ;;  %v3560_v55 = vld [vmem:[%s4014_s2] sm:$0xff] (!%p341_p3)   ;;  %v3330_v48 = vld [vmem:[%s4014_s2 + $0x1f0] sm:$0xff] (!%p341_p3)  }
   0xd   : > { %3068 = vmatpush3.bf16.msra.mxu0 (!%p341_p3), %v3284_v3  ;;  %2949 = vmatprep.subr.bf16.mxu1 (!%p341_p3), %v3285_v4  ;;  %v3298_v3 = vld [vmem:[%s4014_s2 + $0x180] sm:$0xff] (!%p341_p3)   ;;  %v3338_v39 = vld [vmem:[%s4014_s2 + $0xd0] sm:$0xff] (!%p341_p3)  }
   0xe   : > { %s4029_s24 = smov (!%p428_p4, %s3387_s24), 1  ;;  %3069 = vmatprep.subr.bf16.mxu0 %v3286_v5 }
   0xf   : > { %s2772_s21 = sshll.u32 %s4029_s24, 7  ;;  %s3831_s14 = sshll.u32 %s4029_s24, 5 }
  0x10   : > { %2950 = vmatpush3.bf16.msra.mxu1 %v3285_v4  ;;  %s3493_s9 = scalar_lea.vmem %s4012_s0, %s2772_s21  ;;  %s3612_s11 = sadd.s32 64, %s2772_s21 }
  0x11   : > { %3070 = vmatpush3.bf16.msra.mxu0 %v3286_v5  ;;  %2951 = vmatprep.subr.bf16.mxu1 %v3287_v6  ;;  %v3502_v12 = vld [vmem:[%s3493_s9] sm:$0xf]  ;;  %v3505_v13 = vld [vmem:[%s3493_s9 + $0x4] sm:$0xf]  ;;  %v3508_v14 = vld [vmem:[%s3493_s9 + $0x8] sm:$0xf]  ;;  %s3652_s22 = scalar_lea.vmem %s4013_s1, %s3612_s11  ;;  %s3987_s21 = scalar_lea.vmem %s4019_s7, %s3831_s14 }
  0x12   : > { %3071 = vmatprep.subr.bf16.mxu0 %v3288_v7  ;;  %v502_v15 = vld [vmem:[%s3493_s9 + $0xc] sm:$0xf]  ;;  %v3512_v16 = vld [vmem:[%s3493_s9 + $0x10] sm:$0xf]  ;;  %v3515_v17 = vld [vmem:[%s3493_s9 + $0x14] sm:$0xf]  ;;  %s3993_s17 = scalar_lea.vmem %s4018_s6, %s3831_s14 }
  0x13   : > { %v539_v19 = vshrl.u32 %v3502_v12, 16  ;;  %v542_v20 = vshll.u32 %v3502_v12, 16  ;;  %v548_v21 = vshll.u32 %v3505_v13, 16  ;;  %v553_v22 = vshrl.u32 %v3508_v14, 16  ;;  %v506_v42 = vld [vmem:[%s3493_s9 + $0x1c] sm:$0xf] }
  0x14   : > { %2952 = vmatpush3.bf16.msra.mxu1 %v3287_v6  ;;  %v556_v23 = vshll.u32 %v3508_v14, 16  ;;  %v562_v24 = vshll.u32 %v502_v15, 16  ;;  %v567_v27 = vshrl.u32 %v3512_v16, 16  ;;  %v570_v28 = vshll.u32 %v3512_v16, 16  ;;  %v3546_v47 = vld [vmem:[%s3493_s9 + $0x18] sm:$0xf] }
  0x15   : > { %3072 = vmatpush3.bf16.msra.mxu0 %v3288_v7  ;;  %2953 = vmatprep.subr.bf16.mxu1 %v3289_v8  ;;  %v541_v25 = vrot.slane %v539_v19, 4  ;;  %v544_v26 = vrot.slane %v542_v20, 5  ;;  %v550_v30 = vrot.slane %v548_v21, 5  ;;  %v555_v31 = vrot.slane %v553_v22, 4  ;;  %v3565_v58 = vld [vmem:[%s3493_s9 + $0x20] sm:$0xf] }
  0x16   : > { %3073 = vmatprep.subr.bf16.mxu0 %v3290_v9  ;;  %v558_v32 = vrot.slane %v556_v23, 5  ;;  %v569_v35 = vrot.slane %v567_v27, 4  ;;  %v572_v36 = vrot.slane %v570_v28, 5  ;;  %v576_v37 = vshll.u32 %v3515_v17, 16  ;;  %v508_v63 = vld [vmem:[%s3493_s9 + $0x24] sm:$0xf] }
  0x17   : > { %v545_v34 = vor.u32 %v544_v26, %v541_v25  ;;  %v564_v41 = vrot.slane %v562_v24, 5  ;;  %v2561_v43 = vrot.slane %v3508_v14, 9  ;;  %v590_v50 = vshll.u32 %v506_v42, 16  ;;  %v3300_v24 = vld [vmem:[%s4014_s2 + $0x188] sm:$0xff]  }
  0x18   : > { %2954 = vmatpush3.bf16.msra.mxu1 %v3289_v8  ;;  %v559_v40 = vor.u32 %v558_v32, %v555_v31  ;;  %v573_v45 = vor.u32 %v572_v36, %v569_v35  ;;  %v578_v46 = vrot.slane %v576_v37, 5  ;;  %v950_v51 = vrot.slane %v502_v15, 5  ;;  %v3299_v27 = vld [vmem:[%s4014_s2 + $0x8] sm:$0xff]   ;;  %v3302_v31 = vld [vmem:[%s4014_s2 + $0x190] sm:$0xff]  }
  0x19   : > { %3074 = vmatpush3.bf16.msra.mxu0 %v3290_v9  ;;  %2955 = vmatprep.subr.bf16.mxu1 %v3291_v10  ;;  %v546_v44 = vrot.slane %v545_v34, 4  ;;  %v2562_v52 = vrot.slane %v3512_v16, 9  ;;  %v954_v56 = vrot.slane %v3515_v17, 5  ;;  %v2563_v57 = vrot.slane %v3546_v47, 9  ;;  %v3622_v28 = vld [vmem:[%s3493_s9 + $0x28] sm:$0xf] }
  0x1a   : > { %3075 = vmatprep.subr.bf16.mxu0 %v3292_v11  ;;  %v560_v49 = vrot.slane %v559_v40, 4  ;;  %v574_v54 = vrot.slane %v573_v45, 4  ;;  %v3573_v60 = vsel %vm3550_vm5, %v2561_v43, %v950_v51  ;;  %v958_v61 = vrot.slane %v506_v42, 5  ;;  %v510_v32 = vld [vmem:[%s3493_s9 + $0x2c] sm:$0xf]  ;;  %v3304_v45 = vld [vmem:[%s4014_s2 + $0x198] sm:$0xff]  }
  0x1b   : > { %v551_v53 = vsel %vm3539_vm4, %v546_v44, %v550_v30  ;;  %v581_v62 = vshrl.u32 %v3546_v47, 16  ;;  %v955_v2 = vsel %vm3550_vm5, %v2562_v52, %v954_v56  ;;  %v584_v4 = vshll.u32 %v3546_v47, 16  ;;  %v3641_v44 = vld [vmem:[%s3493_s9 + $0x30] sm:$0xf]  ;;  %v512_v51 = vld [vmem:[%s3493_s9 + $0x34] sm:$0xf] }
  0x1c   : > { %2956 = vmatpush3.bf16.msra.mxu1 %v3291_v10  ;;  %v3569_v59 = vsel %vm3539_vm4, %v560_v49, %v564_v41  ;;  %v3579_v0 = vsel %vm3539_vm4, %v574_v54, %v578_v46  ;;  %v959_v6 = vsel %vm3550_vm5, %v2563_v57, %v958_v61  ;;  %v2669_v7 = vcombine.low %v3573_v60, %v955_v2  ;;  %v3301_v41 = vld [vmem:[%s4014_s2 + $0x10] sm:$0xff]  }
  0x1d   : > { %3076 = vmatpush3.bf16.msra.mxu0 %v3292_v11  ;;  %2957 = vmatprep.subr.bf16.mxu1 %v3293_v18  ;;  %v2536_v1 = vcombine.low %v551_v53, %v3569_v59  ;;  %v2640_v5 = vcombine.low %v3569_v59, %v3579_v0  ;;  %v3593_v8 = vcombine.low %v955_v2, %v959_v6  ;;  %v583_v9 = vrot.slane %v581_v62, 4  ;;  %v3662_v62 = vld [vmem:[%s3493_s9 + $0x38] sm:$0xf]  ;;  %v3362_v59 = vld [vmem:[%s4014_s2 + $0x128] sm:$0xff]  }
  0x1e   : > { %3077 = vmatprep.subr.bf16.mxu0 %v3294_v29  ;;  %v586_v10 = vrot.slane %v584_v4, 5  ;;  %v592_v11 = vrot.slane %v590_v50, 5  ;;  %3081 = vmatprep.mubr.bf16.mxu0 %v2669_v7  ;;  %v2564_v15 = vrot.slane %v3565_v58, 9  ;;  %v962_v17 = vrot.slane %v508_v63, 5  ;;  %v3673_v7 = vld [vmem:[%s3652_s22] sm:$0xf] }
  0x1f   : > { %2961 = vmatprep.mubr.bf16.mxu1 %v2536_v1  ;;  %v2613_v20 = vcombine.low %v3546_v47, %v3565_v58  ;;  %v595_v25 = vshrl.u32 %v3565_v58, 16  ;;  %v604_v34 = vshll.u32 %v508_v63, 16  ;;  %v609_v35 = vshrl.u32 %v3622_v28, 16  ;;  %v514_v63 = vld [vmem:[%s3493_s9 + $0x3c] sm:$0xf]  ;;  %s3843_s9 = scalar_lea.vmem %s4016_s4, %s3831_s14 }
  0x20   : > { %2958 = vmatpush3.bf16.msra.mxu1 %v3293_v18  ;;  %v2612_v18 = vcombine.low %v3508_v14, %v3512_v16  ;;  %v587_v19 = vor.u32 %v586_v10, %v583_v9  ;;  %v3603_v21 = vsel %vm3550_vm5, %v2564_v15, %v962_v17  ;;  %v612_v37 = vshll.u32 %v3622_v28, 16  ;;  %v3682_v17 = vld [vmem:[%s3652_s22 + $0x4] sm:$0xf] }
  0x21   : > { %3078 = vmatpush3.bf16.msra.mxu0 %v3294_v29  ;;  %2959 = vmatprep.subr.bf16.mxu1 %v3295_v33  ;;  %v2670_v23 = vcombine.low %v959_v6, %v3603_v21  ;;  %v598_v29 = vshll.u32 %v3565_v58, 16  ;;  %v2565_v40 = vrot.slane %v3622_v28, 9  ;;  %v606_v42 = vrot.slane %v604_v34, 5 }
  0x22   : > { %3079 = vmatprep.subr.bf16.mxu0 %v3296_v38  ;;  %v588_v22 = vrot.slane %v587_v19, 4  ;;  %v611_v43 = vrot.slane %v609_v35, 4  ;;  %v614_v49 = vrot.slane %v612_v37, 5  ;;  %v966_v52 = vrot.slane %v510_v32, 5  ;;  %v3303_v19 = vld [vmem:[%s4014_s2 + $0x18] sm:$0xff]  }
  0x23   : > { %v600_v36 = vrot.slane %v598_v29, 5  ;;  %v2566_v53 = vrot.slane %v3641_v44, 9  ;;  %v970_v54 = vrot.slane %v512_v51, 5  ;;  %v623_v1 = vshrl.u32 %v3641_v44, 16 }
  0x24   : > { %2960 = vmatpush3.bf16.msra.mxu1 %v3295_v33  ;;  %v3616_v26 = vsel %vm3539_vm4, %v588_v22, %v592_v11  ;;  %v597_v33 = vrot.slane %v595_v25, 4  ;;  %v615_v57 = vor.u32 %v614_v49, %v611_v43  ;;  %v3659_v61 = vsel %vm3550_vm5, %v2565_v40, %v966_v52  ;;  %v3308_v40 = vld [vmem:[%s4014_s2 + $0x1a8] sm:$0xff]  }
  0x25   : > { %3080 = vmatpush3.bf16.msra.mxu0 %v3296_v38  ;;  %2969 = vmatprep.subr.bf16.mxu1 %v3560_v55  ;;  %v3627_v30 = vcombine.low %v3579_v0, %v3616_v26  ;;  %v618_v38 = vshll.u32 %v510_v32, 16  ;;  %v3668_v2 = vsel %vm3550_vm5, %v2566_v53, %v970_v54  ;;  %v632_v4 = vshll.u32 %v512_v51, 16  ;;  %v3366_v0 = vld [vmem:[%s4017_s5 + $0x30] sm:$0xff]  }
  0x26   : > { %3089 = vmatprep.subr.bf16.mxu0 %v3298_v3  ;;  %v601_v46 = vor.u32 %v600_v36, %v597_v33  ;;  %v637_v6 = vshrl.u32 %v3662_v62, 16  ;;  %v616_v10 = vrot.slane %v615_v57, 4  ;;  %v2671_v11 = vcombine.low %v3659_v61, %v3668_v2  ;;  %v3307_v57 = vld [vmem:[%s4014_s2 + $0x28] sm:$0xff]  }
  0x27   : > { %2962 = vmatmul.mubr.bf16.vlgmr.msra.gmra.mrb[0].mxu1 %v3627_v30  ;;  %v620_v50 = vrot.slane %v618_v38, 5  ;;  %v625_v15 = vrot.slane %v623_v1, 4  ;;  %v646_v32 = vshll.u32 %v514_v63, 16  ;;  %v2567_v33 = vrot.slane %v3662_v62, 9  ;;  %v3305_v38 = vld [vmem:[%s4014_s2 + $0x20] sm:$0xff]  }
  0x28   : > { %3082 = vmatmul.mubr.bf16.vlgmr.msra.gmra.mrb[0].mxu0 %v2670_v23  ;;  %2970 = vmatpush3.bf16.msra.mxu1 %v3560_v55  ;;  %v2614_v55 = vcombine.low %v3622_v28, %v3641_v44  ;;  %v602_v56 = vrot.slane %v601_v46, 4  ;;  %v639_v25 = vrot.slane %v637_v6, 4  ;;  %v974_v36 = vrot.slane %v514_v63, 5 }
  0x29   : > { %3090 = vmatpush3.bf16.msra.mxu0 %v3298_v3  ;;  %2971 = vmatprep.subr.bf16.mxu1 %v3299_v27  ;;  %v626_v3 = vshll.u32 %v3641_v44, 16  ;;  %v3694_v29 = vsel %vm3539_vm4, %v616_v10, %v620_v50  ;;  %v2652_v37 = vrot.slane %v3673_v7, 9  ;;  %v1442_v43 = vrot.slane %v3682_v17, 5 }
  0x2a   : > { %3091 = vmatprep.subr.bf16.mxu0 %v3300_v24  ;;  %v3677_v9 = vsel %vm3539_vm4, %v602_v56, %v606_v42  ;;  %3085 = vmatprep.mubr.bf16.mxu0 %v2671_v11  ;;  %v648_v49 = vrot.slane %v646_v32, 5  ;;  %v3712_v50 = vsel %vm3550_vm5, %v2567_v33, %v974_v36  ;;  %v2549_v54 = vcombine.low %v3512_v16, %v3546_v47  ;;  %v3311_v32 = vld [vmem:[%s4014_s2 + $0x38] sm:$0xff]   ;;  %v3316_v33 = vld [vmem:[%s4014_s2 + $0x1c0] sm:$0xff]   ;;  %v3346_v16 = vld [vmem:[%s4014_s2 + $0xf0] sm:$0xff]  }
  0x2b   : > { %v2641_v22 = vcombine.low %v3616_v26, %v3677_v9  ;;  %v628_v23 = vrot.slane %v626_v3, 5  ;;  %v3700_v34 = vcombine.low %v3677_v9, %v3694_v29  ;;  %v3719_v52 = vsel %vm3550_vm5, %v2652_v37, %v1442_v43  ;;  %v3310_v3 = vld [vmem:[%s4014_s2 + $0x1b0] sm:$0xff]   ;;  %v3358_v47 = vld [vmem:[%s4014_s2 + $0x118] sm:$0xff]   ;;  %v2769_v26 = vld [vmem:[%s4015_s3] ss:$0 sm:$0xff] }
  0x2c   : > { %2972 = vmatpush3.bf16.msra.mxu1 %v3299_v27  ;;  %v3306_v27 = vld [vmem:[%s4014_s2 + $0x1a0] sm:$0xff]   ;;  %v2672_v53 = vcombine.low %v3712_v50, %v3719_v52  ;;  %v1279_v56 = vshrl.u32 %v3673_v7, 16  ;;  %v1282_v10 = vshll.u32 %v3673_v7, 16  ;;  %v2550_v37 = vcombine.low %v3565_v58, %v3622_v28  ;;  %v3363_v28 = vld [vmem:[%s4017_s5 + $0x28] sm:$0xff]  }
  0x2d   : > { %3092 = vmatpush3.bf16.msra.mxu0 %v3300_v24  ;;  %2973 = vmatprep.subr.bf16.mxu1 %v3301_v41  ;;  %v634_v24 = vrot.slane %v632_v4, 5  ;;  %v629_v35 = vor.u32 %v628_v23, %v625_v15  ;;  %v2548_v15 = vcombine.low %v3502_v12, %v3508_v14  ;;  %v2560_v43 = vrot.slane %v3502_v12, 9  ;;  %v3347_v14 = vld [vmem:[%s4014_s2 + $0x230] sm:$0xff]   ;;  %v3361_v58 = vld [vmem:[%s4017_s5 + $0x20] sm:$0xff]  }
  0x2e   : > { %3093 = vmatprep.subr.bf16.mxu0 %v3302_v31  ;;  %2965 = vmatprep.mubr.bf16.mxu1 %v3700_v34  ;;  %v1281_v6 = vrot.slane %v1279_v56, 4  ;;  %v1284_v23 = vrot.slane %v1282_v10, 5  ;;  %v3320_v56 = vld [vmem:[%s4014_s2 + $0x90] sm:$0xff]   ;;  %v518_v10 = vld [vmem:[%s3652_s22 + $0xc] sm:$0xf] }
  0x2f   : > { %v630_v46 = vrot.slane %v629_v35, 4 }
  0x30   : > { %2974 = vmatpush3.bf16.msra.mxu1 %v3301_v41  ;;  %v2615_v41 = vcombine.low %v3662_v62, %v3673_v7  ;;  %3086 = vmatmul.mubr.bf16.gmra.mrb[4].mxu0 %v2672_v53  ;;  %v3321_v53 = vld [vmem:[%s4014_s2 + $0x1d0] sm:$0xff]  }
  0x31   : > { %3094 = vmatpush3.bf16.msra.mxu0 %v3302_v31  ;;  %v640_v31 = vshll.u32 %v3662_v62, 16  ;;  %2975 = vmatprep.subr.bf16.mxu1 %v3303_v19 }
  0x32   : > { %3095 = vmatprep.subr.bf16.mxu0 %v3304_v45  ;;  %3105 = vmatprep.mubr.bf16.mxu0 %v2549_v54 }
  0x33   : > { %v642_v42 = vrot.slane %v640_v31, 5 }
  0x34   : > { %2976 = vmatpush3.bf16.msra.mxu1 %v3303_v19  ;;  %v1288_v19 = vshll.u32 %v3682_v17, 16 }
  0x35   : > { %3096 = vmatpush3.bf16.msra.mxu0 %v3304_v45  ;;  %v643_v51 = vor.u32 %v642_v42, %v639_v25  ;;  %v3723_v45 = vsel %vm3539_vm4, %v630_v46, %v634_v24  ;;  %2977 = vmatprep.subr.bf16.mxu1 %v3305_v38  ;;  %v3309_v24 = vld [vmem:[%s4014_s2 + $0x30] sm:$0xff]   ;;  %v3312_v25 = vld [vmem:[%s4014_s2 + $0x1b8] sm:$0xff]   ;;  %v2551_v42 = vcombine.low %v3641_v44, %v3662_v62  ;;  %v946_v46 = vrot.slane %v3505_v13, 5  ;;  %v3370_v62 = vld [vmem:[%s3843_s9 + $0x8] sm:$0xff]  }
  0x36   : > { %3097 = vmatprep.subr.bf16.mxu0 %v3306_v27  ;;  %v2642_v1 = vcombine.low %v3694_v29, %v3723_v45  ;;  %v1290_v31 = vrot.slane %v1288_v19, 5  ;;  %v3327_v19 = vld [vmem:[%s4014_s2 + $0x1e8] sm:$0xff]   ;;  %v3368_v44 = vld [vmem:[%s4017_s5 + $0x38] sm:$0xff]  }
  0x37   : > { %v644_v63 = vrot.slane %v643_v51, 4  ;;  %v517_v51 = vld [vmem:[%s3652_s22 + $0x8] sm:$0xf]  ;;  %v947_v13 = vsel %vm3550_vm5, %v2560_v43, %v946_v46  ;;  %v3334_v43 = vld [vmem:[%s4014_s2 + $0xc0] sm:$0xff]  }
  0x38   : > { %2978 = vmatpush3.bf16.msra.mxu1 %v3305_v38  ;;  %v3314_v38 = vld [vmem:[%s4014_s2 + $0x80] sm:$0xff]   ;;  %v2697_v12 = vcombine.low %v3673_v7, %v517_v51  ;;  %v3371_v7 = vld [vmem:[%s3843_s9 + $0x10] sm:$0xff]  }
  0x39   : > { %3098 = vmatpush3.bf16.msra.mxu0 %v3306_v27  ;;  %v3740_v4 = vsel %vm3539_vm4, %v644_v63, %v648_v49  ;;  %2979 = vmatprep.subr.bf16.mxu1 %v3307_v57  ;;  %v1285_v27 = vor.u32 %v1284_v23, %v1281_v6  ;;  %v3318_v49 = vld [vmem:[%s4014_s2 + $0x88] sm:$0xff]   ;;  %v3322_v63 = vld [vmem:[%s4014_s2 + $0x98] sm:$0xff]   ;;  %v2731_v6 = vrot.slane %v517_v51, 9 }
  0x3a   : > { %3099 = vmatprep.subr.bf16.mxu0 %v3308_v40  ;;  %v3745_v11 = vcombine.low %v3723_v45, %v3740_v4 }
  0x3b   : > { %v1286_v17 = vrot.slane %v1285_v27, 4  ;;  %v1737_v27 = vshll.u32 %v517_v51, 16 }
  0x3c   : > { %2966 = vmatmul.mubr.bf16.gmra.mrb[4].mxu1 %v3745_v11 }
  0x3d   : > { %3100 = vmatpush3.bf16.msra.mxu0 %v3308_v40  ;;  %2985 = vmatprep.mubr.bf16.mxu1 %v2548_v15  ;;  %v3765_v35 = vsel %vm3539_vm4, %v1286_v17, %v1290_v31  ;;  %v3319_v40 = vld [vmem:[%s4014_s2 + $0x1c8] sm:$0xff]   ;;  %v3324_v15 = vld [vmem:[%s4014_s2 + $0xa0] sm:$0xff]   ;;  %v3328_v31 = vld [vmem:[%s4014_s2 + $0xb0] sm:$0xff]  }
  0x3e   : > { %3101 = vmatprep.subr.bf16.mxu0 %v3310_v3  ;;  %2980 = vmatpush3.bf16.msra.mxu1 %v3307_v57  ;;  %v2643_v36 = vcombine.low %v3740_v4, %v3765_v35  ;;  %v3323_v57 = vld [vmem:[%s4014_s2 + $0x1d8] sm:$0xff]  }
  0x3f   : > { %2981 = vmatprep.subr.bf16.mxu1 %v3309_v24 }
  0x41   : > { %3102 = vmatpush3.bf16.msra.mxu0 %v3310_v3  ;;  %v3325_v3 = vld [vmem:[%s4014_s2 + $0x1e0] sm:$0xff]  }
  0x42   : > { %3103 = vmatprep.subr.bf16.mxu0 %v3312_v25  ;;  %2982 = vmatpush3.bf16.msra.mxu1 %v3309_v24  ;;  %v3326_v24 = vld [vmem:[%s4014_s2 + $0xa8] sm:$0xff]  }
  0x43   : > { %2983 = vmatprep.subr.bf16.mxu1 %v3311_v32 }
  0x45   : > { %3104 = vmatpush3.bf16.msra.mxu0 %v3312_v25  ;;  %v1734_v25 = vshrl.u32 %v517_v51, 16  ;;  %v3337_v51 = vld [vmem:[%s4014_s2 + $0x208] sm:$0xff]  }
  0x46   : > { %3113 = vmatprep.subr.bf16.mxu0 %v3316_v33  ;;  %2984 = vmatpush3.bf16.msra.mxu1 %v3311_v32  ;;  %v1739_v32 = vrot.slane %v1737_v27, 5 }
  0x47   : > { %2993 = vmatprep.subr.bf16.mxu1 %v3314_v38  ;;  %v1736_v17 = vrot.slane %v1734_v25, 4 }
  0x48   : > { %3106 = vmatmul.mubr.bf16.vlgmr.msra.gmra.mrb[0].mxu0 %v2550_v37 }
  0x49   : > { %3114 = vmatpush3.bf16.msra.mxu0 %v3316_v33  ;;  %3109 = vmatprep.mubr.bf16.mxu0 %v2551_v42  ;;  %v3333_v33 = vld [vmem:[%s4014_s2 + $0x1f8] sm:$0xff]  }
  0x4a   : > { %3115 = vmatprep.subr.bf16.mxu0 %v3319_v40  ;;  %2986 = vmatmul.mubr.bf16.vlgmr.msra.gmra.mrb[0].mxu1 %v2549_v54  ;;  %v2584_v54 = vcombine.low %v947_v13, %v3573_v60  ;;  %v1891_v60 = vrot.slane %v518_v10, 5 }
  0x4b   : > { %2994 = vmatpush3.bf16.msra.mxu1 %v3314_v38  ;;  %2989 = vmatprep.mubr.bf16.mxu1 %v2550_v37  ;;  %v3332_v37 = vld [vmem:[%s4014_s2 + $0xb8] sm:$0xff]   ;;  %v1740_v38 = vor.u32 %v1739_v32, %v1736_v17 }
  0x4c   : > { %2995 = vmatprep.subr.bf16.mxu1 %v3318_v49 }
  0x4d   : > { %3116 = vmatpush3.bf16.msra.mxu0 %v3319_v40  ;;  %v1743_v40 = vshll.u32 %v518_v10, 16  ;;  %v1741_v46 = vrot.slane %v1740_v38, 4  ;;  %v3354_v10 = vld [vmem:[%s4014_s2 + $0x108] sm:$0xff]  }
  0x4e   : > { %3117 = vmatprep.subr.bf16.mxu0 %v3321_v53 }
  0x4f   : > { %2996 = vmatpush3.bf16.msra.mxu1 %v3318_v49  ;;  %v1745_v49 = vrot.slane %v1743_v40, 5 }
  0x50   : > { %3110 = vmatmul.mubr.bf16.gmra.mrb[4].mxu0 %v2697_v12  ;;  %2997 = vmatprep.subr.bf16.mxu1 %v3320_v56  ;;  %v3336_v12 = vld [vmem:[%s4014_s2 + $0xc8] sm:$0xff]  }
  0x51   : > { %3118 = vmatpush3.bf16.msra.mxu0 %v3321_v53  ;;  %3129 = vmatprep.mubr.bf16.mxu0 %v3627_v30  ;;  %v3814_v30 = vsel %vm3550_vm5, %v2731_v6, %v1891_v60  ;;  %v2586_v53 = vcombine.low %v3603_v21, %v3659_v61  ;;  %v1746_v13 = vsel %vm3539_vm4, %v1741_v46, %v1745_v49  ;;  %v3341_v61 = vld [vmem:[%s4014_s2 + $0x218] sm:$0xff]   ;;  %v3355_v6 = vld [vmem:[%s4017_s5 + $0x8] sm:$0xff]   ;;  %v3357_v60 = vld [vmem:[%s4017_s5 + $0x10] sm:$0xff]  }
  0x52   : > { %3119 = vmatprep.subr.bf16.mxu0 %v3323_v57  ;;  %2990 = vmatmul.mubr.bf16.gmra.mrb[4].mxu1 %v2551_v42  ;;  %v2748_v23 = vcombine.low %v3719_v52, %v3814_v30  ;;  %v3335_v42 = vld [vmem:[%s4014_s2 + $0x200] sm:$0xff]   ;;  %v2722_v21 = vcombine.low %v3765_v35, %v1746_v13 }
  0x53   : > { %2998 = vmatpush3.bf16.msra.mxu1 %v3320_v56  ;;  %3009 = vmatprep.mubr.bf16.mxu1 %v2584_v54  ;;  %v3339_v56 = vld [vmem:[%s4014_s2 + $0x210] sm:$0xff]   ;;  %v3348_v54 = vld [vmem:[%s4014_s2 + $0xf8] sm:$0xff]  }
  0x54   : > { %2999 = vmatprep.subr.bf16.mxu1 %v3322_v63 }
  0x55   : > { %3120 = vmatpush3.bf16.msra.mxu0 %v3323_v57  ;;  %v3343_v57 = vld [vmem:[%s4014_s2 + $0x220] sm:$0xff]  }
  0x56   : > { %3121 = vmatprep.subr.bf16.mxu0 %v3325_v3 }
  0x57   : > { %3000 = vmatpush3.bf16.msra.mxu1 %v3322_v63  ;;  %v3352_v63 = vld [vmem:[%s4017_s5] sm:$0xff]  }
  0x58   : > { %3001 = vmatprep.subr.bf16.mxu1 %v3324_v15 }
  0x59   : > { %3122 = vmatpush3.bf16.msra.mxu0 %v3325_v3  ;;  %v3351_v3 = vld [vmem:[%s4014_s2 + $0x100] sm:$0xff]  }
  0x5a   : > { %3123 = vmatprep.subr.bf16.mxu0 %v3327_v19 }
  0x5b   : > { %3002 = vmatpush3.bf16.msra.mxu1 %v3324_v15  ;;  %v3356_v15 = vld [vmem:[%s4014_s2 + $0x110] sm:$0xff]  }
  0x5c   : > { %3003 = vmatprep.subr.bf16.mxu1 %v3326_v24 }
  0x5d   : > { %3124 = vmatpush3.bf16.msra.mxu0 %v3327_v19  ;;  %v3359_v19 = vld [vmem:[%s4017_s5 + $0x18] sm:$0xff]  }
  0x5e   : > { %3125 = vmatprep.subr.bf16.mxu0 %v3330_v48 }
  0x5f   : > { %3004 = vmatpush3.bf16.msra.mxu1 %v3326_v24  ;;  %v3369_v24 = vld [vmem:[%s3843_s9] sm:$0xff]  }
  0x60   : > { %3005 = vmatprep.subr.bf16.mxu1 %v3328_v31 }
  0x61   : > { %3126 = vmatpush3.bf16.msra.mxu0 %v3330_v48 }
  0x62   : > { %3127 = vmatprep.subr.bf16.mxu0 %v3333_v33 }
  0x63   : > { %3006 = vmatpush3.bf16.msra.mxu1 %v3328_v31 }
  0x64   : > { %3007 = vmatprep.subr.bf16.mxu1 %v3332_v37 }
  0x65   : > { %3128 = vmatpush3.bf16.msra.mxu0 %v3333_v33 }
  0x66   : > { %3137 = vmatprep.subr.bf16.mxu0 %v3335_v42 }
  0x67   : > { %3008 = vmatpush3.bf16.msra.mxu1 %v3332_v37 }
  0x68   : > { %3130 = vmatmul.mubr.bf16.vlgmr.msra.gmra.mrb[0].mxu0 %v3700_v34  ;;  %3017 = vmatprep.subr.bf16.mxu1 %v3334_v43  ;;  %v2587_v34 = vcombine.low %v3668_v2, %v3712_v50  ;;  %v3342_v2 = vld [vmem:[%s4014_s2 + $0xe0] sm:$0xff]   ;;  %v3345_v50 = vld [vmem:[%s4014_s2 + $0x228] sm:$0xff]  }
  0x69   : > { %3138 = vmatpush3.bf16.msra.mxu0 %v3335_v42  ;;  %3133 = vmatprep.mubr.bf16.mxu0 %v3745_v11  ;;  %v3340_v11 = vld [vmem:[%s4014_s2 + $0xd8] sm:$0xff]  }
  0x6a   : > { %3139 = vmatprep.subr.bf16.mxu0 %v3337_v51  ;;  %3010 = vmatmul.mubr.bf16.vlgmr.msra.gmra.mrb[0].mxu1 %v3593_v8 }
  0x6b   : > { %3018 = vmatpush3.bf16.msra.mxu1 %v3334_v43  ;;  %3013 = vmatprep.mubr.bf16.mxu1 %v2586_v53 }
  0x6c   : > { %3019 = vmatprep.subr.bf16.mxu1 %v3336_v12 }
  0x6d   : > { %3140 = vmatpush3.bf16.msra.mxu0 %v3337_v51 }
  0x6e   : > { %3141 = vmatprep.subr.bf16.mxu0 %v3339_v56 }
  0x6f   : > { %3020 = vmatpush3.bf16.msra.mxu1 %v3336_v12 }
  0x70   : > { %3134 = vmatmul.mubr.bf16.gmra.mrb[4].mxu0 %v2722_v21  ;;  %3021 = vmatprep.subr.bf16.mxu1 %v3338_v39 }
  0x71   : > { %3142 = vmatpush3.bf16.msra.mxu0 %v3339_v56  ;;  %3153 = vmatprep.mubr.bf16.mxu0 %v3593_v8  ;;  %v3344_v8 = vld [vmem:[%s4014_s2 + $0xe8] sm:$0xff]  }
  0x72   : > { %3143 = vmatprep.subr.bf16.mxu0 %v3341_v61  ;;  %3014 = vmatmul.mubr.bf16.gmra.mrb[4].mxu1 %v2587_v34 }
  0x73   : > { %3022 = vmatpush3.bf16.msra.mxu1 %v3338_v39  ;;  %3033 = vmatprep.mubr.bf16.mxu1 %v2612_v18  ;;  %v3349_v18 = vld [vmem:[%s4014_s2 + $0x238] sm:$0xff]  }
  0x74   : > { %3023 = vmatprep.subr.bf16.mxu1 %v3340_v11 }
  0x75   : > { %3144 = vmatpush3.bf16.msra.mxu0 %v3341_v61 }
  0x76   : > { %3145 = vmatprep.subr.bf16.mxu0 %v3343_v57 }
  0x77   : > { %3024 = vmatpush3.bf16.msra.mxu1 %v3340_v11 }
  0x78   : > { %3025 = vmatprep.subr.bf16.mxu1 %v3342_v2 }
  0x79   : > { %3146 = vmatpush3.bf16.msra.mxu0 %v3343_v57 }
  0x7a   : > { %3147 = vmatprep.subr.bf16.mxu0 %v3345_v50 }
  0x7b   : > { %3026 = vmatpush3.bf16.msra.mxu1 %v3342_v2 }
  0x7c   : > { %3027 = vmatprep.subr.bf16.mxu1 %v3344_v8 }
  0x7d   : > { %3148 = vmatpush3.bf16.msra.mxu0 %v3345_v50 }
  0x7e   : > { %3149 = vmatprep.subr.bf16.mxu0 %v3347_v14 }
  0x7f   : > { %3028 = vmatpush3.bf16.msra.mxu1 %v3344_v8 }
  0x80   : > { %3029 = vmatprep.subr.bf16.mxu1 %v3346_v16 }
  0x81   : > { %3150 = vmatpush3.bf16.msra.mxu0 %v3347_v14 }
  0x82   : > { %3151 = vmatprep.subr.bf16.mxu0 %v3349_v18 }
  0x83   : > { %3030 = vmatpush3.bf16.msra.mxu1 %v3346_v16 }
  0x84   : > { %3031 = vmatprep.subr.bf16.mxu1 %v3348_v54 }
  0x85   : > { %3152 = vmatpush3.bf16.msra.mxu0 %v3349_v18 }
  0x86   : > { %3161 = vmatprep.subr.bf16.mxu0 %v3352_v63 }
  0x87   : > { %3032 = vmatpush3.bf16.msra.mxu1 %v3348_v54 }
  0x88   : > { %3154 = vmatmul.mubr.bf16.vlgmr.msra.gmra.mrb[0].mxu0 %v2586_v53  ;;  %3041 = vmatprep.subr.bf16.mxu1 %v3351_v3 }
  0x89   : > { %3162 = vmatpush3.bf16.msra.mxu0 %v3352_v63  ;;  %3157 = vmatprep.mubr.bf16.mxu0 %v2587_v34 }
  0x8a   : > { %3163 = vmatprep.subr.bf16.mxu0 %v3355_v6  ;;  %3034 = vmatmul.mubr.bf16.vlgmr.msra.gmra.mrb[0].mxu1 %v2613_v20  ;;  %v3360_v20 = vld [vmem:[%s4014_s2 + $0x120] sm:$0xff]  }
  0x8b   : > { %3042 = vmatpush3.bf16.msra.mxu1 %v3351_v3  ;;  %3037 = vmatprep.mubr.bf16.mxu1 %v2614_v55  ;;  %v3367_v55 = vld [vmem:[%s4014_s2 + $0x138] sm:$0xff]  }
  0x8c   : > { %3043 = vmatprep.subr.bf16.mxu1 %v3354_v10 }
  0x8d   : > { %3164 = vmatpush3.bf16.msra.mxu0 %v3355_v6 }
  0x8e   : > { %3165 = vmatprep.subr.bf16.mxu0 %v3357_v60 }
  0x8f   : > { %3044 = vmatpush3.bf16.msra.mxu1 %v3354_v10 }
  0x90   : > { %3158 = vmatmul.mubr.bf16.gmra.mrb[4].mxu0 %v2748_v23  ;;  %3045 = vmatprep.subr.bf16.mxu1 %v3356_v15 }
  0x91   : > { %3166 = vmatpush3.bf16.msra.mxu0 %v3357_v60  ;;  %3177 = vmatprep.mubr.bf16.mxu0 %v3369_v24 }
  0x92   : > { %3167 = vmatprep.subr.bf16.mxu0 %v3359_v19  ;;  %3038 = vmatmul.mubr.bf16.gmra.mrb[4].mxu1 %v2615_v41  ;;  %v3372_v41 = vld [vmem:[%s3843_s9 + $0x18] sm:$0xff]  }
  0x93   : > { %3046 = vmatpush3.bf16.msra.mxu1 %v3356_v15  ;;  %3057 = vmatprep.mubr.bf16.mxu1 %v2640_v5  ;;  %v3365_v5 = vld [vmem:[%s4014_s2 + $0x130] sm:$0xff]  }
  0x94   : > { %3047 = vmatprep.subr.bf16.mxu1 %v3358_v47 }
  0x95   : > { %3168 = vmatpush3.bf16.msra.mxu0 %v3359_v19 }
  0x96   : > { %3169 = vmatprep.subr.bf16.mxu0 %v3361_v58 }
  0x97   : > { %3048 = vmatpush3.bf16.msra.mxu1 %v3358_v47 }
  0x98   : > { %3049 = vmatprep.subr.bf16.mxu1 %v3360_v20 }
  0x99   : > { %3170 = vmatpush3.bf16.msra.mxu0 %v3361_v58 }
  0x9a   : > { %3171 = vmatprep.subr.bf16.mxu0 %v3363_v28 }
  0x9b   : > { %3050 = vmatpush3.bf16.msra.mxu1 %v3360_v20 }
  0x9c   : > { %3051 = vmatprep.subr.bf16.mxu1 %v3362_v59 }
  0x9d   : > { %3172 = vmatpush3.bf16.msra.mxu0 %v3363_v28 }
  0x9e   : > { %3173 = vmatprep.subr.bf16.mxu0 %v3366_v0 }
  0x9f   : > { %3052 = vmatpush3.bf16.msra.mxu1 %v3362_v59 }
  0xa0   : > { %3053 = vmatprep.subr.bf16.mxu1 %v3365_v5 }
  0xa1   : > { %3174 = vmatpush3.bf16.msra.mxu0 %v3366_v0 }
  0xa2   : > { %3175 = vmatprep.subr.bf16.mxu0 %v3368_v44 }
  0xa3   : > { %3054 = vmatpush3.bf16.msra.mxu1 %v3365_v5 }
  0xa4   : > { %3055 = vmatprep.subr.bf16.mxu1 %v3367_v55 }
  0xa5   : > { %3176 = vmatpush3.bf16.msra.mxu0 %v3368_v44 }
  0xa7   : > { %3056 = vmatpush3.bf16.msra.mxu1 %v3367_v55 }
  0xa8   : > { %3178 = vmatmul.mubr.bf16.vlgmr.msra.gmra.mrb[0].mxu0 %v3370_v62 }
  0xa9   : > { %3181 = vmatprep.mubr.bf16.mxu0 %v3371_v7 }
  0xaa   : > { %3058 = vmatmul.mubr.bf16.vlgmr.msra.gmra.mrb[0].mxu1 %v2641_v22 }
  0xab   : > { %3061 = vmatprep.mubr.bf16.mxu1 %v2642_v1 }
  0xb0   : > { %3182 = vmatmul.mubr.bf16.gmra.mrb[4].mxu0 %v3372_v41 }
  0xb2   : > { %3062 = vmatmul.mubr.bf16.gmra.mrb[4].mxu1 %v2643_v36 }
 0x17b   : > { %v3179_v52 = vpop.f32.mrb[0].mxu0 }
 0x17c   : > { %v2164_v30 = vpop.f32.mrb[1].mxu0 }
 0x17d   : > { %v3180_v23 = vpop.f32.mrb[2].mxu0  ;;  %v3059_v25 = vpop.f32.mrb[0].mxu1 }
 0x17e   : > { %v2167_v9 = vpop.f32.mrb[3].mxu0  ;;  %v3185_v22 = vadd.f32 %v3179_v52, %v3059_v25  ;;  %v1400_v27 = vpop.f32.mrb[1].mxu1 }
 0x17f   : > { %v3186_v29 = vadd.f32 %v2164_v30, %v1400_v27  ;;  %v3060_v45 = vpop.f32.mrb[2].mxu1 }
 0x180   : > { %v2212_v1 = vadd.f32 %v3185_v22, %v2769_v26  ;;  %v3187_v48 = vadd.f32 %v3180_v23, %v3060_v45  ;;  %v1403_v31 = vpop.f32.mrb[3].mxu1 }
 0x181   : > { %v2210_v4 = vadd.f32 %v3186_v29, %v2769_v26  ;;  %v3188_v35 = vadd.f32 %v2167_v9, %v1403_v31 }
 0x182   : > { %v2213_v36 = vadd.f32 %v3187_v48, %v2769_v26  ;;  %v2236_v37 = vmax.f32 %v2212_v1, 0.0 }
 0x183   : > { %v3183_v17 = vpop.f32.mrb[4].mxu0  ;;  %v2211_v32 = vadd.f32 %v3188_v35, %v2769_v26  ;;  %v2234_v43 = vmax.f32 %v2210_v4, 0.0 }
 0x184   : > { %v2180_v33 = vpop.f32.mrb[5].mxu0  ;;  %v2786_v38 = vpack.c.bf16 %v2213_v36, %v2212_v1  ;;  %v2237_v40 = vmax.f32 %v2213_v36, 0.0 }
 0x185   : > { %v3184_v42 = vpop.f32.mrb[6].mxu0  ;;  %v2781_v46 = vpack.c.bf16 %v2211_v32, %v2210_v4  ;;  %v2235_v49 = vmax.f32 %v2211_v32, 0.0  ;;  %v3063_v51 = vpop.f32.mrb[4].mxu1 }
 0x186   : > { %v2183_v53 = vpop.f32.mrb[7].mxu0  ;;  %2819 = vst [vmem:[%s3987_s21 + $0x8] sm:$0xff] %v2786_v38   ;;  %v2806_v12 = vpack.c.bf16 %v2237_v40, %v2236_v37  ;;  %v3189_v13 = vadd.f32 %v3183_v17, %v3063_v51  ;;  %v1416_v56 = vpop.f32.mrb[5].mxu1 }
 0x187   : > { %2782 = vst [vmem:[%s3987_s21] sm:$0xff] %v2781_v46   ;;  %v2801_v21 = vpack.c.bf16 %v2235_v49, %v2234_v43  ;;  %v3190_v39 = vadd.f32 %v2180_v33, %v1416_v56  ;;  %v3064_v61 = vpop.f32.mrb[6].mxu1 }
 0x188   : > { %2822 = vst [vmem:[%s3993_s17 + $0x8] sm:$0xff] %v2806_v12   ;;  %v2216_v34 = vadd.f32 %v3189_v13, %v2769_v26  ;;  %v3191_v11 = vadd.f32 %v3184_v42, %v3064_v61  ;;  %v1419_v57 = vpop.f32.mrb[7].mxu1 }
 0x189   : > { %2802 = vst [vmem:[%s3993_s17] sm:$0xff] %v2801_v21   ;;  %v2214_v2 = vadd.f32 %v3190_v39, %v2769_v26  ;;  %v3192_v50 = vadd.f32 %v2183_v53, %v1419_v57 }
 0x18a   : > { %v2217_v8 = vadd.f32 %v3191_v11, %v2769_v26  ;;  %v2240_v16 = vmax.f32 %v2216_v34, 0.0 }
 0x18b   : > { %v2215_v14 = vadd.f32 %v3192_v50, %v2769_v26  ;;  %v2238_v63 = vmax.f32 %v2214_v2, 0.0 }
 0x18c   : > { %v2796_v18 = vpack.c.bf16 %v2217_v8, %v2216_v34  ;;  %v2241_v54 = vmax.f32 %v2217_v8, 0.0 }
 0x18d   : > { %v2791_v3 = vpack.c.bf16 %v2215_v14, %v2214_v2  ;;  %v2239_v6 = vmax.f32 %v2215_v14, 0.0 }
 0x18e   : > { %2821 = vst [vmem:[%s3987_s21 + $0x18] sm:$0xff] %v2796_v18   ;;  %v2816_v10 = vpack.c.bf16 %v2241_v54, %v2240_v16 }
 0x18f   : > { %2820 = vst [vmem:[%s3987_s21 + $0x10] sm:$0xff] %v2791_v3   ;;  %v2811_v60 = vpack.c.bf16 %v2239_v6, %v2238_v63 }
 0x190   : > { %2824 = vst [vmem:[%s3993_s17 + $0x18] sm:$0xff] %v2816_v10  }
 0x191   : > { %2823 = vst [vmem:[%s3993_s17 + $0x10] sm:$0xff] %v2811_v60  }
 0x192 PF: > { %s18_s26 = sadd.s32 1, %s3395_s26   ;;  %s4024_s24 = smov %s3391_s25 }
 0x193   : > { %p15_p5 = scmp.ge.s32.totalorder %s18_s26, 4   ;;  %s4025_s25 = smov %s4027_s27 }
 0x195   :  { %17 = sbr.rel (!%p15_p5) target bundleno = 2 (0x2), region = 109 }

</bundles_post_ra>
